<compile_context>
chip_gen: v5e
topology: v5e:2x2
jax: 0.10.0
libtpu: 0.0.40
codegen_flags: <defaults>
</compile_context>

<pallas_src>
import math

import jax
import jax.numpy as jnp
from jax.experimental import pallas as pl
from jax.experimental.pallas import tpu as pltpu

# ---- configuration (small shapes consistent with the module) ---------------
B = 2                    # batch
CIN = 8                  # backbone.num_channels
H = W = 16               # feature-map spatial size
HW = H * W
HID = 64                 # transformer.d_model (hidden_dim)
NUM_GROUPS = 32          # GroupNorm(32, hidden_dim)
GS = HID // NUM_GROUPS   # channels per group
NUM_BINS = 100
NUM_CLASSES = 25
NUM_VOCAL = NUM_BINS + 1 + NUM_CLASSES + 2   # 128 (bins + classes + specials)
NUM_SEQ = 16             # output sequence length of the transformer stand-in
EPS = 1e-5               # nn.GroupNorm default eps


def pix2seq_kernel(x_ref, cw_ref, cgb_ref, gmat_ref, pos_ref, q_ref,
                   wv_ref, out_ref):
    bb = x_ref.shape[0]          # batch elements in this block (B or 1)
    inv_hw = 1.0 / HW
    scale = 1.0 / math.sqrt(HID)

    # ---- input_proj[0]: 1x1 Conv2d == channel matmul, batched over bb ------
    # x block [bb, CIN, HW] widened along lanes -> [CIN, bb*HW]; the conv for
    # the whole block is a single MXU push.  cgb columns: [conv_b|gamma|beta].
    if bb == 1:
        x_wide = x_ref[0]
    else:
        x_wide = jnp.concatenate([x_ref[b] for b in range(bb)], axis=1)
    y_wide = (jnp.dot(cw_ref[...], x_wide, preferred_element_type=jnp.float32)
              + cgb_ref[:, 0:1])                                # [HID, bb*HW]

    # ---- input_proj[1]: GroupNorm(32, HID), biased variance ----------------
    # Per-channel moments per batch element (lane reductions), then ONE fused
    # gmat @ [HID, 2*bb] MXU push aggregates both moments for every group of
    # every batch element.
    # NOTE: one-pass variance (E[x^2]-E[x]^2); fine at these controlled
    #       feature scales (two-pass would cost a second gmat push).
    # NOTE: gmat assumes contiguous channel groups of size GS (matches the
    #       nn.GroupNorm channel grouping).
    stats_cols = []
    for b in range(bb):
        y_b = y_wide[:, b * HW:(b + 1) * HW]
        stats_cols.append(jnp.sum(y_b, axis=1, keepdims=True) * inv_hw)
        stats_cols.append(jnp.sum(y_b * y_b, axis=1, keepdims=True) * inv_hw)
    gstats = jnp.dot(gmat_ref[...], jnp.concatenate(stats_cols, axis=1),
                     preferred_element_type=jnp.float32)        # [HID, 2*bb]

    # Attention scale hoisted out of the per-batch loop (applied to q once).
    q_scaled = q_ref[...] * scale                               # [S, HID]

    ctx_rows = []
    for b in range(bb):
        gmean = gstats[:, 2 * b:2 * b + 1]
        gvar = gstats[:, 2 * b + 1:2 * b + 2] - gmean * gmean
        inv_std = jax.lax.rsqrt(gvar + EPS)
        y_b = y_wide[:, b * HW:(b + 1) * HW]
        src_b = ((y_b - gmean) * (inv_std * cgb_ref[:, 1:2])
                 + cgb_ref[:, 2:3])                             # [HID, HW]

        # ---- transformer stand-in (inference: transformer(src,-1,mask,pos)) -
        # mask is zeroed in the reference forward, so no masking is applied.
        mem_b = src_b + pos_ref[...]                            # [HID, HW]
        scores = jnp.dot(q_scaled, mem_b,
                         preferred_element_type=jnp.float32)    # [S, HW]
        m = jnp.max(scores, axis=-1, keepdims=True)
        p = jnp.exp(scores - m)
        ssum = jnp.sum(p, axis=-1, keepdims=True)               # [S, 1]
        # unnormalized context, contraction over HW (rhs-transposed matmul)
        ctx = jax.lax.dot_general(p, mem_b, (((1,), (1,)), ((), ())),
                                  preferred_element_type=jnp.float32)  # [S,HID]
        # deferred softmax normalization on the EUP (idle slot)
        ctx_rows.append(ctx * pl.reciprocal(ssum, approx=True))

    # ---- vocab head: ONE batched matmul for the whole block; bias folded ---
    # into the vocab weight (extra input row) against a ones column, so the
    # output write is a single unmasked lane-dense full-block store.
    ctx_all = ctx_rows[0] if bb == 1 else jnp.concatenate(ctx_rows, axis=0)
    ctx_aug = jnp.concatenate(
        [ctx_all, jnp.ones((bb * NUM_SEQ, 1), jnp.float32)], axis=1)
    logits = jnp.dot(ctx_aug, wv_ref[...],
                     preferred_element_type=jnp.float32)        # [bb*S, V]
    out_ref[...] = logits.reshape(bb, NUM_SEQ, NUM_VOCAL).astype(out_ref.dtype)


def _two_tensorcore_chip():
    # v7x has 2 TensorCores per chip; shard the batch across them.  On
    # single-TC chips (v5e/v6e) the per-grid-step fixed overhead dominates
    # this ~3 MFLOP kernel, so keep the whole batch in one invocation there.
    try:
        kind = jax.devices()[0].device_kind.lower()
    except Exception:
        return False
    return "v7" in kind or "7x" in kind


def pix2seq_forward(x_nchw, params, *, batch_parallel=None):
    if batch_parallel is None:
        batch_parallel = _two_tensorcore_chip()

    # Free reshape of NCHW (no host-side transpose / HBM round trip).
    x = x_nchw.reshape(B, CIN, HW)

    # Pack the three [HID,1] params into one [HID,3] array (one DMA/pipeline
    # buffer instead of three) and fold the vocab bias into the vocab weight.
    cgb = jnp.concatenate(
        [params["conv_b"], params["gamma"], params["beta"]], axis=1)
    wv_aug = jnp.concatenate([params["wv"], params["bv"]], axis=0)

    if batch_parallel:
        grid = (B,)
        bb = 1
        batched_map = lambda i: (i, 0, 0)
        semantics = ("parallel",)
    else:
        grid = (1,)
        bb = B
        batched_map = lambda i: (0, 0, 0)
        semantics = ("arbitrary",)

    cost = pl.CostEstimate(flops=3_300_000, transcendentals=8_500,
                           bytes_accessed=160_000)

    grid_spec = pltpu.PrefetchScalarGridSpec(
        num_scalar_prefetch=0,
        grid=grid,
        in_specs=[
            pl.BlockSpec((bb, CIN, HW), batched_map),              # features
            pl.BlockSpec((HID, CIN), lambda i: (0, 0)),            # conv W
            pl.BlockSpec((HID, 3), lambda i: (0, 0)),              # b|gamma|beta
            pl.BlockSpec((HID, HID), lambda i: (0, 0)),            # group-avg
            pl.BlockSpec((HID, HW), lambda i: (0, 0)),             # pos (dedup)
            pl.BlockSpec((NUM_SEQ, HID), lambda i: (0, 0)),        # queries
            pl.BlockSpec((HID + 1, NUM_VOCAL), lambda i: (0, 0)),  # vocab W|b
        ],
        out_specs=pl.BlockSpec((bb, NUM_SEQ, NUM_VOCAL), batched_map),
    )
    # Total resident footprint ~0.5 MiB: far under VMEM on v5e/v6e (128 MiB)
    # and v7x (64 MiB) -> no vmem_limit_bytes tuning needed.
    out = pl.pallas_call(
        pix2seq_kernel,
        out_shape=jax.ShapeDtypeStruct((B, NUM_SEQ, NUM_VOCAL), jnp.float32),
        grid_spec=grid_spec,
        cost_estimate=cost,
        compiler_params=pltpu.CompilerParams(dimension_semantics=semantics),
    )(x, params["conv_w"], cgb, params["gmat"], params["pos"],
      params["query"], wv_aug)
    return {"pred_seq_logits": out}


def make_pos_embedding(h, w, dim):
    """Deterministic 2D sinusoidal positional embedding, shape [h*w, dim]."""
    half = dim // 2
    div = jnp.exp(jnp.arange(0, half, 2, dtype=jnp.float32)
                  * (-math.log(10000.0) / half))
    ys = jnp.arange(h, dtype=jnp.float32)[:, None] * div[None, :]
    xs = jnp.arange(w, dtype=jnp.float32)[:, None] * div[None, :]
    pos_y = jnp.concatenate([jnp.sin(ys), jnp.cos(ys)], axis=-1)   # [h, half]
    pos_x = jnp.concatenate([jnp.sin(xs), jnp.cos(xs)], axis=-1)   # [w, half]
    pos = jnp.concatenate([
        jnp.broadcast_to(pos_y[:, None, :], (h, w, half)),
        jnp.broadcast_to(pos_x[None, :, :], (h, w, half)),
    ], axis=-1)
    return pos.reshape(h * w, dim)


def make_params(key):
    k = jax.random.split(key, 4)
    conv_w = jax.random.normal(k[0], (HID, CIN), jnp.float32) * 0.1  # torch layout
    conv_b = jnp.zeros((HID, 1), jnp.float32)
    gamma = jnp.ones((HID, 1), jnp.float32)       # nn.GroupNorm init
    beta = jnp.zeros((HID, 1), jnp.float32)
    gidx = jnp.arange(HID) // GS
    gmat = (gidx[:, None] == gidx[None, :]).astype(jnp.float32) / GS
    pos = make_pos_embedding(H, W, HID).T          # [HID, HW], stored ONCE
    query = jax.random.normal(k[1], (NUM_SEQ, HID), jnp.float32) * 0.1
    wv = jax.random.normal(k[2], (HID, NUM_VOCAL), jnp.float32) * 0.1
    bv = jnp.zeros((1, NUM_VOCAL), jnp.float32)
    return dict(conv_w=conv_w, conv_b=conv_b, gamma=gamma, beta=beta,
                gmat=gmat, pos=pos, query=query, wv=wv, bv=bv)


def reference_forward(x_nchw, p):
    """Pure-JAX reference of the same math, for verification."""
    x = jnp.transpose(x_nchw, (0, 2, 3, 1)).reshape(B, HW, CIN)
    y = jnp.einsum("bnc,kc->bnk", x, p["conv_w"]) + p["conv_b"][:, 0][None, None]
    yg = y.reshape(B, HW, NUM_GROUPS, GS)
    mean = yg.mean(axis=(1, 3), keepdims=True)
    var = ((yg - mean) ** 2).mean(axis=(1, 3), keepdims=True)
    src = ((yg - mean) / jnp.sqrt(var + EPS)).reshape(B, HW, HID)
    src = src * p["gamma"][:, 0][None, None] + p["beta"][:, 0][None, None]
    mem = src + p["pos"].T[None]
    scores = jnp.einsum("sh,bnh->bsn", p["query"], mem) / math.sqrt(HID)
    attn = jax.nn.softmax(scores, axis=-1)
    ctx = jnp.einsum("bsn,bnh->bsh", attn, mem)
    return jnp.einsum("bsh,hv->bsv", ctx, p["wv"]) + p["bv"][None]


# TODO(synk): backbone CNN and the full autoregressive transformer are
# external injected modules (not defined in pix2seq.py); deterministic
# stand-ins are used.  build_input_seq (training-only random token synthesis)
# is not part of the inference forward and is not implemented.

if __name__ == "__main__":
    key = jax.random.PRNGKey(0)
    kx, kp = jax.random.split(key)
    # backbone feature map playing the role of features[-1] (NCHW like PyTorch)
    x = jax.random.normal(kx, (B, CIN, H, W), jnp.float32)
    params = make_params(kp)

    out = pix2seq_forward(x, params)
    logits = jax.block_until_ready(out["pred_seq_logits"])

    ref = reference_forward(x, params)
    assert logits.shape == (B, NUM_SEQ, NUM_VOCAL)
    # tolerance covers the ~1e-4-level error of the approximate EUP reciprocal
    assert jnp.allclose(logits, ref, rtol=2e-3, atol=2e-3)
    print("KERNEL_OK")
</pallas_src>

<mosaic_0001>
module attributes {stable_mosaic.version = 11 : i64} {
  func.func @pix2seq_kernel(%arg0: i32, %arg1: memref<2x8x256xf32, #tpu.memory_space<vmem>>, %arg2: memref<64x8xf32, #tpu.memory_space<vmem>>, %arg3: memref<64x3xf32, #tpu.memory_space<vmem>>, %arg4: memref<64x64xf32, #tpu.memory_space<vmem>>, %arg5: memref<64x256xf32, #tpu.memory_space<vmem>>, %arg6: memref<16x64xf32, #tpu.memory_space<vmem>>, %arg7: memref<65x128xf32, #tpu.memory_space<vmem>>, %arg8: memref<2x16x128xf32, #tpu.memory_space<vmem>>) attributes {dimension_semantics = [#tpu.dimension_semantics<arbitrary>], iteration_bounds = array<i64: 1>, scalar_prefetch = 0 : i64, scratch_operands = 0 : i64, tpu.core_type = #tpu.core_type<tc>, window_params = [{pipeline_mode = #tpu.pipeline_mode<synchronous>, transform_indices = @transform_0, window_bounds = array<i64: 2, 8, 256>}, {pipeline_mode = #tpu.pipeline_mode<synchronous>, transform_indices = @transform_1, window_bounds = array<i64: 64, 8>}, {pipeline_mode = #tpu.pipeline_mode<synchronous>, transform_indices = @transform_2, window_bounds = array<i64: 64, 3>}, {pipeline_mode = #tpu.pipeline_mode<synchronous>, transform_indices = @transform_3, window_bounds = array<i64: 64, 64>}, {pipeline_mode = #tpu.pipeline_mode<synchronous>, transform_indices = @transform_4, window_bounds = array<i64: 64, 256>}, {pipeline_mode = #tpu.pipeline_mode<synchronous>, transform_indices = @transform_5, window_bounds = array<i64: 16, 64>}, {pipeline_mode = #tpu.pipeline_mode<synchronous>, transform_indices = @transform_6, window_bounds = array<i64: 65, 128>}, {pipeline_mode = #tpu.pipeline_mode<synchronous>, transform_indices = @transform_7, window_bounds = array<i64: 2, 16, 128>}]} {
    %c0 = arith.constant 0 : index
    %c0_0 = arith.constant 0 : index
    %c0_1 = arith.constant 0 : index
    %0 = vector.load %arg1[%c0, %c0_0, %c0_1] : memref<2x8x256xf32, #tpu.memory_space<vmem>>, vector<1x8x256xf32>
    %1 = vector.shape_cast %0 : vector<1x8x256xf32> to vector<8x256xf32>
    %c1 = arith.constant 1 : index
    %c0_2 = arith.constant 0 : index
    %c0_3 = arith.constant 0 : index
    %2 = vector.load %arg1[%c1, %c0_2, %c0_3] : memref<2x8x256xf32, #tpu.memory_space<vmem>>, vector<1x8x256xf32>
    %3 = vector.shape_cast %2 : vector<1x8x256xf32> to vector<8x256xf32>
    %4 = tpu.concatenate %1, %3 in 1 : vector<8x256xf32>, vector<8x256xf32> -> vector<8x512xf32>
    %c0_4 = arith.constant 0 : index
    %c0_5 = arith.constant 0 : index
    %5 = vector.load %arg2[%c0_4, %c0_5] : memref<64x8xf32, #tpu.memory_space<vmem>>, vector<64x8xf32>
    %cst = arith.constant dense<0.000000e+00> : vector<64x512xf32>
    %6 = tpu.matmul %5, %4, %cst {dimension_numbers = #tpu.dot_dimension_numbers<[1], [0], [0], [1], [0, 0, 1, 1], [], []>} : vector<64x8xf32>, vector<8x512xf32>, vector<64x512xf32> -> vector<64x512xf32>
    %c0_6 = arith.constant 0 : index
    %c0_7 = arith.constant 0 : index
    %7 = vector.load %arg3[%c0_6, %c0_7] : memref<64x3xf32, #tpu.memory_space<vmem>>, vector<64x1xf32>
    %8 = vector.broadcast %7 : vector<64x1xf32> to vector<64x512xf32>
    %9 = arith.addf %6, %8 : vector<64x512xf32>
    %10 = vector.extract_strided_slice %9 {offsets = [0, 0], sizes = [64, 256], strides = [1, 1]} : vector<64x512xf32> to vector<64x256xf32>
    %cst_8 = arith.constant dense<0.000000e+00> : vector<64xf32>
    %11 = vector.multi_reduction <add>, %10, %cst_8 [1] : vector<64x256xf32> to vector<64xf32>
    %12 = vector.shape_cast %11 : vector<64xf32> to vector<64x1xf32>
    %cst_9 = arith.constant 3.906250e-03 : f32
    %13 = vector.broadcast %cst_9 : f32 to vector<64x1xf32>
    %14 = arith.mulf %12, %13 : vector<64x1xf32>
    %15 = arith.mulf %10, %10 : vector<64x256xf32>
    %cst_10 = arith.constant dense<0.000000e+00> : vector<64xf32>
    %16 = vector.multi_reduction <add>, %15, %cst_10 [1] : vector<64x256xf32> to vector<64xf32>
    %17 = vector.shape_cast %16 : vector<64xf32> to vector<64x1xf32>
    %cst_11 = arith.constant 3.906250e-03 : f32
    %18 = vector.broadcast %cst_11 : f32 to vector<64x1xf32>
    %19 = arith.mulf %17, %18 : vector<64x1xf32>
    %20 = vector.extract_strided_slice %9 {offsets = [0, 256], sizes = [64, 256], strides = [1, 1]} : vector<64x512xf32> to vector<64x256xf32>
    %cst_12 = arith.constant dense<0.000000e+00> : vector<64xf32>
    %21 = vector.multi_reduction <add>, %20, %cst_12 [1] : vector<64x256xf32> to vector<64xf32>
    %22 = vector.shape_cast %21 : vector<64xf32> to vector<64x1xf32>
    %cst_13 = arith.constant 3.906250e-03 : f32
    %23 = vector.broadcast %cst_13 : f32 to vector<64x1xf32>
    %24 = arith.mulf %22, %23 : vector<64x1xf32>
    %25 = arith.mulf %20, %20 : vector<64x256xf32>
    %cst_14 = arith.constant dense<0.000000e+00> : vector<64xf32>
    %26 = vector.multi_reduction <add>, %25, %cst_14 [1] : vector<64x256xf32> to vector<64xf32>
    %27 = vector.shape_cast %26 : vector<64xf32> to vector<64x1xf32>
    %cst_15 = arith.constant 3.906250e-03 : f32
    %28 = vector.broadcast %cst_15 : f32 to vector<64x1xf32>
    %29 = arith.mulf %27, %28 : vector<64x1xf32>
    %c0_16 = arith.constant 0 : index
    %c0_17 = arith.constant 0 : index
    %30 = vector.load %arg4[%c0_16, %c0_17] : memref<64x64xf32, #tpu.memory_space<vmem>>, vector<64x64xf32>
    %31 = tpu.concatenate %14, %19, %24, %29 in 1 : vector<64x1xf32>, vector<64x1xf32>, vector<64x1xf32>, vector<64x1xf32> -> vector<64x4xf32>
    %cst_18 = arith.constant dense<0.000000e+00> : vector<64x4xf32>
    %32 = tpu.matmul %30, %31, %cst_18 {dimension_numbers = #tpu.dot_dimension_numbers<[1], [0], [0], [1], [0, 0, 1, 1], [], []>} : vector<64x64xf32>, vector<64x4xf32>, vector<64x4xf32> -> vector<64x4xf32>
    %c0_19 = arith.constant 0 : index
    %c0_20 = arith.constant 0 : index
    %33 = vector.load %arg6[%c0_19, %c0_20] : memref<16x64xf32, #tpu.memory_space<vmem>>, vector<16x64xf32>
    %cst_21 = arith.constant 1.250000e-01 : f32
    %34 = vector.broadcast %cst_21 : f32 to vector<16x64xf32>
    %35 = arith.mulf %33, %34 : vector<16x64xf32>
    %36 = vector.extract_strided_slice %32 {offsets = [0, 0], sizes = [64, 1], strides = [1, 1]} : vector<64x4xf32> to vector<64x1xf32>
    %37 = vector.extract_strided_slice %32 {offsets = [0, 1], sizes = [64, 1], strides = [1, 1]} : vector<64x4xf32> to vector<64x1xf32>
    %38 = arith.mulf %36, %36 : vector<64x1xf32>
    %39 = arith.subf %37, %38 : vector<64x1xf32>
    %cst_22 = arith.constant 9.99999974E-6 : f32
    %40 = vector.broadcast %cst_22 : f32 to vector<64x1xf32>
    %41 = arith.addf %39, %40 : vector<64x1xf32>
    %42 = math.rsqrt %41 : vector<64x1xf32>
    %43 = vector.extract_strided_slice %9 {offsets = [0, 0], sizes = [64, 256], strides = [1, 1]} : vector<64x512xf32> to vector<64x256xf32>
    %44 = vector.broadcast %36 : vector<64x1xf32> to vector<64x256xf32>
    %45 = arith.subf %43, %44 : vector<64x256xf32>
    %c0_23 = arith.constant 0 : index
    %c1_24 = arith.constant 1 : index
    %46 = vector.load %arg3[%c0_23, %c1_24] : memref<64x3xf32, #tpu.memory_space<vmem>>, vector<64x1xf32>
    %47 = arith.mulf %42, %46 : vector<64x1xf32>
    %48 = vector.broadcast %47 : vector<64x1xf32> to vector<64x256xf32>
    %49 = arith.mulf %45, %48 : vector<64x256xf32>
    %c0_25 = arith.constant 0 : index
    %c2 = arith.constant 2 : index
    %50 = vector.load %arg3[%c0_25, %c2] : memref<64x3xf32, #tpu.memory_space<vmem>>, vector<64x1xf32>
    %51 = vector.broadcast %50 : vector<64x1xf32> to vector<64x256xf32>
    %52 = arith.addf %49, %51 : vector<64x256xf32>
    %c0_26 = arith.constant 0 : index
    %c0_27 = arith.constant 0 : index
    %53 = vector.load %arg5[%c0_26, %c0_27] : memref<64x256xf32, #tpu.memory_space<vmem>>, vector<64x256xf32>
    %54 = arith.addf %52, %53 : vector<64x256xf32>
    %cst_28 = arith.constant dense<0.000000e+00> : vector<16x256xf32>
    %55 = tpu.matmul %35, %54, %cst_28 {dimension_numbers = #tpu.dot_dimension_numbers<[1], [0], [0], [1], [0, 0, 1, 1], [], []>} : vector<16x64xf32>, vector<64x256xf32>, vector<16x256xf32> -> vector<16x256xf32>
    %cst_29 = arith.constant dense<0xFF800000> : vector<16xf32>
    %56 = vector.multi_reduction <maximumf>, %55, %cst_29 [1] : vector<16x256xf32> to vector<16xf32>
    %57 = vector.shape_cast %56 : vector<16xf32> to vector<16x1xf32>
    %58 = vector.broadcast %57 : vector<16x1xf32> to vector<16x256xf32>
    %59 = arith.subf %55, %58 : vector<16x256xf32>
    %60 = math.exp %59 : vector<16x256xf32>
    %cst_30 = arith.constant dense<0.000000e+00> : vector<16xf32>
    %61 = vector.multi_reduction <add>, %60, %cst_30 [1] : vector<16x256xf32> to vector<16xf32>
    %62 = vector.shape_cast %61 : vector<16xf32> to vector<16x1xf32>
    %cst_31 = arith.constant dense<0.000000e+00> : vector<16x64xf32>
    %63 = tpu.matmul %60, %54, %cst_31 {dimension_numbers = #tpu.dot_dimension_numbers<[1], [1], [0], [0], [0, 0, 1, 0], [], []>} : vector<16x256xf32>, vector<64x256xf32>, vector<16x64xf32> -> vector<16x64xf32>
    %64 = tpu.reciprocal %62 {approx = true} : vector<16x1xf32> -> vector<16x1xf32>
    %65 = vector.broadcast %64 : vector<16x1xf32> to vector<16x64xf32>
    %66 = arith.mulf %63, %65 : vector<16x64xf32>
    %67 = vector.extract_strided_slice %32 {offsets = [0, 2], sizes = [64, 1], strides = [1, 1]} : vector<64x4xf32> to vector<64x1xf32>
    %68 = vector.extract_strided_slice %32 {offsets = [0, 3], sizes = [64, 1], strides = [1, 1]} : vector<64x4xf32> to vector<64x1xf32>
    %69 = arith.mulf %67, %67 : vector<64x1xf32>
    %70 = arith.subf %68, %69 : vector<64x1xf32>
    %cst_32 = arith.constant 9.99999974E-6 : f32
    %71 = vector.broadcast %cst_32 : f32 to vector<64x1xf32>
    %72 = arith.addf %70, %71 : vector<64x1xf32>
    %73 = math.rsqrt %72 : vector<64x1xf32>
    %74 = vector.extract_strided_slice %9 {offsets = [0, 256], sizes = [64, 256], strides = [1, 1]} : vector<64x512xf32> to vector<64x256xf32>
    %75 = vector.broadcast %67 : vector<64x1xf32> to vector<64x256xf32>
    %76 = arith.subf %74, %75 : vector<64x256xf32>
    %c0_33 = arith.constant 0 : index
    %c1_34 = arith.constant 1 : index
    %77 = vector.load %arg3[%c0_33, %c1_34] : memref<64x3xf32, #tpu.memory_space<vmem>>, vector<64x1xf32>
    %78 = arith.mulf %73, %77 : vector<64x1xf32>
    %79 = vector.broadcast %78 : vector<64x1xf32> to vector<64x256xf32>
    %80 = arith.mulf %76, %79 : vector<64x256xf32>
    %c0_35 = arith.constant 0 : index
    %c2_36 = arith.constant 2 : index
    %81 = vector.load %arg3[%c0_35, %c2_36] : memref<64x3xf32, #tpu.memory_space<vmem>>, vector<64x1xf32>
    %82 = vector.broadcast %81 : vector<64x1xf32> to vector<64x256xf32>
    %83 = arith.addf %80, %82 : vector<64x256xf32>
    %c0_37 = arith.constant 0 : index
    %c0_38 = arith.constant 0 : index
    %84 = vector.load %arg5[%c0_37, %c0_38] : memref<64x256xf32, #tpu.memory_space<vmem>>, vector<64x256xf32>
    %85 = arith.addf %83, %84 : vector<64x256xf32>
    %cst_39 = arith.constant dense<0.000000e+00> : vector<16x256xf32>
    %86 = tpu.matmul %35, %85, %cst_39 {dimension_numbers = #tpu.dot_dimension_numbers<[1], [0], [0], [1], [0, 0, 1, 1], [], []>} : vector<16x64xf32>, vector<64x256xf32>, vector<16x256xf32> -> vector<16x256xf32>
    %cst_40 = arith.constant dense<0xFF800000> : vector<16xf32>
    %87 = vector.multi_reduction <maximumf>, %86, %cst_40 [1] : vector<16x256xf32> to vector<16xf32>
    %88 = vector.shape_cast %87 : vector<16xf32> to vector<16x1xf32>
    %89 = vector.broadcast %88 : vector<16x1xf32> to vector<16x256xf32>
    %90 = arith.subf %86, %89 : vector<16x256xf32>
    %91 = math.exp %90 : vector<16x256xf32>
    %cst_41 = arith.constant dense<0.000000e+00> : vector<16xf32>
    %92 = vector.multi_reduction <add>, %91, %cst_41 [1] : vector<16x256xf32> to vector<16xf32>
    %93 = vector.shape_cast %92 : vector<16xf32> to vector<16x1xf32>
    %cst_42 = arith.constant dense<0.000000e+00> : vector<16x64xf32>
    %94 = tpu.matmul %91, %85, %cst_42 {dimension_numbers = #tpu.dot_dimension_numbers<[1], [1], [0], [0], [0, 0, 1, 0], [], []>} : vector<16x256xf32>, vector<64x256xf32>, vector<16x64xf32> -> vector<16x64xf32>
    %95 = tpu.reciprocal %93 {approx = true} : vector<16x1xf32> -> vector<16x1xf32>
    %96 = vector.broadcast %95 : vector<16x1xf32> to vector<16x64xf32>
    %97 = arith.mulf %94, %96 : vector<16x64xf32>
    %98 = tpu.concatenate %66, %97 in 0 : vector<16x64xf32>, vector<16x64xf32> -> vector<32x64xf32>
    %cst_43 = arith.constant 1.000000e+00 : f32
    %99 = vector.broadcast %cst_43 : f32 to vector<32x1xf32>
    %100 = tpu.concatenate %98, %99 in 1 : vector<32x64xf32>, vector<32x1xf32> -> vector<32x65xf32>
    %c0_44 = arith.constant 0 : index
    %c0_45 = arith.constant 0 : index
    %101 = vector.load %arg7[%c0_44, %c0_45] : memref<65x128xf32, #tpu.memory_space<vmem>>, vector<65x128xf32>
    %cst_46 = arith.constant dense<0.000000e+00> : vector<32x128xf32>
    %102 = tpu.matmul %100, %101, %cst_46 {dimension_numbers = #tpu.dot_dimension_numbers<[1], [0], [0], [1], [0, 0, 1, 1], [], []>} : vector<32x65xf32>, vector<65x128xf32>, vector<32x128xf32> -> vector<32x128xf32>
    %103 = vector.shape_cast %102 : vector<32x128xf32> to vector<2x16x128xf32>
    %c0_47 = arith.constant 0 : index
    %c0_48 = arith.constant 0 : index
    %c0_49 = arith.constant 0 : index
    %104 = vector.load %arg8[%c0_47, %c0_48, %c0_49] : memref<2x16x128xf32, #tpu.memory_space<vmem>>, vector<2x16x128xf32>
    tpu.vector_store %arg8[%c0_47, %c0_48, %c0_49], %103 {strides = array<i32>} : memref<2x16x128xf32, #tpu.memory_space<vmem>>, vector<2x16x128xf32>,
    return
  }
  func.func @transform_0(%arg0: i32) -> (i32, i32, i32) {
    %c0_i32 = arith.constant 0 : i32
    %c0_i32_0 = arith.constant 0 : i32
    %c0_i32_1 = arith.constant 0 : i32
    %c0_i32_2 = arith.constant 0 : i32
    return %c0_i32, %c0_i32_0, %c0_i32_1 : i32, i32, i32
  }
  func.func @transform_1(%arg0: i32) -> (i32, i32) {
    %c0_i32 = arith.constant 0 : i32
    %c0_i32_0 = arith.constant 0 : i32
    %c0_i32_1 = arith.constant 0 : i32
    return %c0_i32, %c0_i32_0 : i32, i32
  }
  func.func @transform_2(%arg0: i32) -> (i32, i32) {
    %c0_i32 = arith.constant 0 : i32
    %c0_i32_0 = arith.constant 0 : i32
    %c0_i32_1 = arith.constant 0 : i32
    return %c0_i32, %c0_i32_0 : i32, i32
  }
  func.func @transform_3(%arg0: i32) -> (i32, i32) {
    %c0_i32 = arith.constant 0 : i32
    %c0_i32_0 = arith.constant 0 : i32
    %c0_i32_1 = arith.constant 0 : i32
    return %c0_i32, %c0_i32_0 : i32, i32
  }
  func.func @transform_4(%arg0: i32) -> (i32, i32) {
    %c0_i32 = arith.constant 0 : i32
    %c0_i32_0 = arith.constant 0 : i32
    %c0_i32_1 = arith.constant 0 : i32
    return %c0_i32, %c0_i32_0 : i32, i32
  }
  func.func @transform_5(%arg0: i32) -> (i32, i32) {
    %c0_i32 = arith.constant 0 : i32
    %c0_i32_0 = arith.constant 0 : i32
    %c0_i32_1 = arith.constant 0 : i32
    return %c0_i32, %c0_i32_0 : i32, i32
  }
  func.func @transform_6(%arg0: i32) -> (i32, i32) {
    %c0_i32 = arith.constant 0 : i32
    %c0_i32_0 = arith.constant 0 : i32
    %c0_i32_1 = arith.constant 0 : i32
    return %c0_i32, %c0_i32_0 : i32, i32
  }
  func.func @transform_7(%arg0: i32) -> (i32, i32, i32) {
    %c0_i32 = arith.constant 0 : i32
    %c0_i32_0 = arith.constant 0 : i32
    %c0_i32_1 = arith.constant 0 : i32
    %c0_i32_2 = arith.constant 0 : i32
    return %c0_i32, %c0_i32_0, %c0_i32_1 : i32, i32, i32
  }
}

</mosaic_0001>

<bundles_post_ra>
// kernel: tpu_custom_call.1
= control target key start
LH: loop header
LB: loop body
LE: loop exit
PB: predicated region body
PF: predicated region fallthrough
CT: control target
= control target key end

     0   :  { %12 = vsyncpa [#allocation3], 0  ;;  %s2612_s0 = inlined_call_operand.hbm [shape: f32[2,8,256], index: 0, kind: input, shape index: {}]   ;;  %s2613_s1 = inlined_call_operand.vmem [shape: f32[64,8], index: 1, kind: input, shape index: {}]   ;;  %s2614_s2 = inlined_call_operand.vmem [shape: f32[64,3], index: 2, kind: input, shape index: {}]   ;;  %s2615_s3 = inlined_call_operand.hbm [shape: f32[64,64], index: 3, kind: input, shape index: {}]   ;;  %s2616_s4 = inlined_call_operand.vmem [shape: f32[64,256], index: 4, kind: input, shape index: {}]   ;;  %s2617_s5 = inlined_call_operand.hbm [shape: f32[16,64], index: 5, kind: input, shape index: {}]   ;;  %s2618_s6 = inlined_call_operand.hbm [shape: f32[65,128], index: 6, kind: input, shape index: {}]   ;;  %s2619_s7 = inlined_call_operand.hbm [shape: f32[2,16,128], index: 7, kind: output, shape index: {}]  }
   0x1   :  { %13 = vsyncpa [#allocation6], 0 }
   0x2   :  { %14 = vsyncpa [#allocation9], 0  ;;  %s37_s26 = sshll.u32 %s2615_s3, 4  ;;  %s38_s26 = int_to_ptr.hbm [resolvable:$true] %s37_s26 }
   0x3   :  { %15 = vsyncpa [#allocation4], 0  ;;  %s1701_s27 = smov [#allocation5]   ;;  %s20_s8 = sshll.u32 %s2612_s0, 4  ;;  %s21_s8 = int_to_ptr.hbm [resolvable:$true] %s20_s8 }
   0x4   :  { %s39_s28 = sshll.u32 %s1701_s27, 4  ;;  %s1702_s9 = smov 128   ;;  %s40_s28 = int_to_ptr.vmem [resolvable:$true] %s39_s28 }
   0x5   :  { %s1703_s10 = smov 8   ;;  %s1704_s11 = smov [#allocation2]  }
   0x6   :  { %45 = dma.hbm_to_vmem [thread:$0]  %s38_s26, 1024, %s40_s28, [#allocation6], %s1702_s9, %s1702_s9, %s1703_s10  }
   0x7   :  { %s22_s12 = sshll.u32 %s1704_s11, 4  ;;  %s1705_s3 = smov 256   ;;  %s23_s12 = int_to_ptr.vmem [resolvable:$true] %s22_s12 }
   0x8   :  { %s1706_s13 = smov 16   ;;  %s52_s16 = sshll.u32 %s2617_s5, 4  ;;  %s53_s16 = int_to_ptr.hbm [resolvable:$true] %s52_s16 }
   0x9   :  { %28 = dma.hbm_to_vmem [thread:$0]  %s21_s8, 512, %s23_s12, [#allocation3], %s1705_s3, %s1705_s3, %s1706_s13  }
   0xa   :  { %s1707_s17 = smov [#allocation7]   ;;  %s65_s20 = sshll.u32 %s2618_s6, 4  ;;  %s66_s20 = int_to_ptr.hbm [resolvable:$true] %s65_s20 }
   0xb   :  { %s54_s0 = sshll.u32 %s1707_s17, 4  ;;  %s1708_s21 = smov [#allocation8]   ;;  %s55_s0 = int_to_ptr.vmem [resolvable:$true] %s54_s0 }
   0xc   :  { %60 = dma.hbm_to_vmem [thread:$0]  %s53_s16, 256, %s55_s0, [#allocation6], %s1702_s9, %s1702_s9, %s1703_s10  }
   0xd   :  { %s67_s22 = sshll.u32 %s1708_s21, 4  ;;  %s68_s22 = int_to_ptr.vmem [resolvable:$true] %s67_s22 }
   0xe   :  { %73 = dma.hbm_to_vmem [thread:$0]  %s66_s20, 1152, %s68_s22, [#allocation9], %s1702_s9, %s1702_s9, %s1703_s10  }
   0xf   :  { %1693 = dma.done.wait [#allocation3], 512  }
  0x10   :  { %1694 = vsyncadd [#allocation3], 4294966784 }
  0x11   :  { %1695 = dma.done.wait [#allocation6], 1280  }
  0x12   :  { %1696 = vsyncadd [#allocation6], 4294966016 }
  0x13   :  { %1697 = dma.done.wait [#allocation9], 1152  }
  0x14   :  { %1698 = vsyncadd [#allocation9], 4294966144  ;;  %v1709_v0 = vmov 0   ;;  %v1780_v1 = vld [vmem:[%s2614_s2 + $0x28] sm:$0xff]  ;;  %v90_v2 = vld [vmem:[#allocation2] sm:$0xff]  ;;  %vm151_vm0 = vcmask 64512  }
  0x15   :  { %1517 = vset.pattern.permute.xlu1 %v1709_v0  ;;  %1516 = vset.pattern.permute.xlu0 %v1709_v0  ;;  %v91_v3 = vld [vmem:[#allocation2 + $0x8] sm:$0xff]  ;;  %v93_v4 = vld [vmem:[#allocation2 + $0x10] sm:$0xff]  ;;  %v94_v5 = vld [vmem:[#allocation2 + $0x18] sm:$0xff]  ;;  %vm508_vm1 = vcmask 7168   ;;  %vm517_vm2 = vcmask 15360   ;;  %vm526_vm3 = vcmask 23552  }
  0x16   :  { %1518 = vset.pattern.permute.xlu2 %v1709_v0  ;;  %138 = vperm.xlu1 %1517, %v1780_v1   ;;  %v95_v6 = vld [vmem:[%s2613_s1] sm:$0xff]  ;;  %v1789_v7 = vld [vmem:[%s2614_s2 + $0x38] sm:$0xff]  ;;  %v96_v10 = vld [vmem:[%s2613_s1 + $0x8] sm:$0xff]  ;;  %vm535_vm4 = vcmask 523264   ;;  %s1713_s28 = smov 2   ;;  %s1424_s0 = sshll.u32 %s2619_s7, 4  ;;  %s1425_s0 = int_to_ptr.hbm [resolvable:$true] %s1424_s0 }
  0x17   :  { %191 = vmatpush.msra.mxu0 %v90_v2  ;;  %232 = vmatpush.msra.mxu1 %v91_v3  ;;  %v1799_v8 = vld [vmem:[%s2614_s2 + $0x18] sm:$0xff]  ;;  %v1804_v9 = vld [vmem:[%s2614_s2 + $0x20] sm:$0xff]  ;;  %v1814_v11 = vld [vmem:[%s2614_s2 + $0x30] sm:$0xff] }
  0x18   :  { %273 = vmatpush.msra.mxu2 %v93_v4  ;;  %314 = vmatpush.msra.mxu3 %v94_v5  ;;  %v1824_v12 = vld [vmem:[%s2614_s2 + $0x10] sm:$0xff]  ;;  %v1829_v13 = vld [vmem:[%s2614_s2] sm:$0xff]  ;;  %v1839_v15 = vld [vmem:[%s2614_s2 + $0x8] sm:$0xff] }
  0x19   :  { %1439 = vmatmul.msk.f32.vlgmr.msra.gmra.mxu0 %vm151_vm0, %v95_v6  ;;  %1447 = vmatmul.msk.f32.vlgmr.msra.gmra.mxu1 %vm151_vm0, %v95_v6  ;;  %v97_v14 = vld [vmem:[%s2613_s1 + $0x10] sm:$0xff]  ;;  %v98_v16 = vld [vmem:[%s2613_s1 + $0x18] sm:$0xff]  ;;  %v99_v17 = vld [vmem:[%s2613_s1 + $0x20] sm:$0xff] }
  0x1a   :  { %1455 = vmatmul.msk.f32.vlgmr.msra.gmra.mxu2 %vm151_vm0, %v95_v6  ;;  %1463 = vmatmul.msk.f32.vlgmr.msra.gmra.mxu3 %vm151_vm0, %v95_v6  ;;  %v100_v18 = vld [vmem:[%s2613_s1 + $0x28] sm:$0xff]  ;;  %v101_v19 = vld [vmem:[%s2613_s1 + $0x30] sm:$0xff]  ;;  %v102_v20 = vld [vmem:[%s2613_s1 + $0x38] sm:$0xff]  ;;  %s1710_s1 = smov 1  }
  0x1b   :  { %148 = vperm.xlu0 %1516, %v1789_v7   ;;  %128 = vperm.xlu2 %1518, %v1799_v8  }
  0x1e   :  { %133 = vperm.xlu1 %1517, %v1804_v9  }
  0x21   :  { %1440 = vmatmul.msk.f32.gmra.mxu0 %vm151_vm0, %v96_v10  ;;  %1448 = vmatmul.msk.f32.gmra.mxu1 %vm151_vm0, %v96_v10 }
  0x22   :  { %1456 = vmatmul.msk.f32.gmra.mxu2 %vm151_vm0, %v96_v10  ;;  %1464 = vmatmul.msk.f32.gmra.mxu3 %vm151_vm0, %v96_v10 }
  0x23   :  { %143 = vperm.xlu0 %1516, %v1814_v11   ;;  %123 = vperm.xlu2 %1518, %v1824_v12  }
  0x26   :  { %113 = vperm.xlu1 %1517, %v1829_v13  }
  0x29   :  { %1441 = vmatmul.msk.f32.gmra.mxu0 %vm151_vm0, %v97_v14  ;;  %1449 = vmatmul.msk.f32.gmra.mxu1 %vm151_vm0, %v97_v14 }
  0x2a   :  { %1457 = vmatmul.msk.f32.gmra.mxu2 %vm151_vm0, %v97_v14  ;;  %1465 = vmatmul.msk.f32.gmra.mxu3 %vm151_vm0, %v97_v14 }
  0x2b   :  { %118 = vperm.xlu0 %1516, %v1839_v15  }
  0x31   :  { %1442 = vmatmul.msk.f32.gmra.mxu0 %vm151_vm0, %v98_v16  ;;  %1450 = vmatmul.msk.f32.gmra.mxu1 %vm151_vm0, %v98_v16 }
  0x32   :  { %1458 = vmatmul.msk.f32.gmra.mxu2 %vm151_vm0, %v98_v16  ;;  %1466 = vmatmul.msk.f32.gmra.mxu3 %vm151_vm0, %v98_v16 }
  0x39   :  { %1443 = vmatmul.msk.f32.gmra.mxu0 %vm151_vm0, %v99_v17  ;;  %1451 = vmatmul.msk.f32.gmra.mxu1 %vm151_vm0, %v99_v17 }
  0x3a   :  { %1459 = vmatmul.msk.f32.gmra.mxu2 %vm151_vm0, %v99_v17  ;;  %1467 = vmatmul.msk.f32.gmra.mxu3 %vm151_vm0, %v99_v17 }
  0x41   :  { %1444 = vmatmul.msk.f32.gmra.mxu0 %vm151_vm0, %v100_v18  ;;  %1452 = vmatmul.msk.f32.gmra.mxu1 %vm151_vm0, %v100_v18 }
  0x42   :  { %1460 = vmatmul.msk.f32.gmra.mxu2 %vm151_vm0, %v100_v18  ;;  %1468 = vmatmul.msk.f32.gmra.mxu3 %vm151_vm0, %v100_v18 }
  0x49   :  { %1445 = vmatmul.msk.f32.gmra.mxu0 %vm151_vm0, %v101_v19  ;;  %1453 = vmatmul.msk.f32.gmra.mxu1 %vm151_vm0, %v101_v19 }
  0x4a   :  { %1461 = vmatmul.msk.f32.gmra.mxu2 %vm151_vm0, %v101_v19  ;;  %1469 = vmatmul.msk.f32.gmra.mxu3 %vm151_vm0, %v101_v19 }
  0x51   :  { %1446 = vmatmul.msk.f32.gmra.mxu0 %vm151_vm0, %v102_v20  ;;  %1454 = vmatmul.msk.f32.gmra.mxu1 %vm151_vm0, %v102_v20 }
  0x52   :  { %1462 = vmatmul.msk.f32.gmra.mxu2 %vm151_vm0, %v102_v20  ;;  %1470 = vmatmul.msk.f32.gmra.mxu3 %vm151_vm0, %v102_v20 }
  0x75   :  { %v129_v25 = vpop.permute.xlu2 %128 }
  0x7d   :  { %v124_v37 = vpop.permute.xlu2 %123 }
  0x88   :  { %v1921_v47 = vpop.permute.xlu1 %138 }
  0x8d   :  { %v1881_v21 = vpop.permute.xlu0 %148 }
  0x90   :  { %v134_v59 = vpop.permute.xlu1 %133 }
  0x95   :  { %v1883_v22 = vpop.permute.xlu0 %143 }
  0x96   :  { %v1885_v23 = vpop.f32.mrf.mxu0  ;;  %v1887_v24 = vpop.f32.mrf.mxu1 }
  0x9d   :  { %v1889_v26 = vpop.f32.mrf.mxu2  ;;  %v1891_v27 = vpop.permute.xlu0 %118 }
  0x9e   :  { %v1893_v28 = vpop.f32.mrf.mxu3  ;;  %v196_v29 = vpop.f32.mrf.mxu0 }
  0x9f   :  { %v1896_v30 = vadd.f32 %v196_v29, %v1891_v27  ;;  %v237_v31 = vpop.f32.mrf.mxu1 }
  0xa0   :  { %v1899_v32 = vadd.f32 %v237_v31, %v1891_v27 }
  0xa1   :  { %v374_v33 = vmul.f32 %v1896_v30, %v1896_v30 }
  0xa2   :  { %v343_v34 = vadd.f32 %v1899_v32, %v1896_v30  ;;  %v375_v35 = vmul.f32 %v1899_v32, %v1899_v32 }
  0xa4   :  { %344 = vadd.xlane.f32.xlu0 %v343_v34  ;;  %v391_v36 = vadd.f32 %v375_v35, %v374_v33 }
  0xa5   :  { %v1907_v38 = vpop.f32.mrf.mxu2 }
  0xa6   :  { %v1909_v39 = vpop.f32.mrf.mxu3  ;;  %392 = vadd.xlane.f32.xlu1 %v391_v36  ;;  %v199_v40 = vpop.f32.mrf.mxu0 }
  0xa7   :  { %v1911_v41 = vadd.f32 %v199_v40, %v124_v37  ;;  %v240_v42 = vpop.f32.mrf.mxu1 }
  0xa8   :  { %v1913_v43 = vadd.f32 %v240_v42, %v124_v37 }
  0xa9   :  { %v376_v44 = vmul.f32 %v1911_v41, %v1911_v41 }
  0xaa   :  { %v346_v45 = vadd.f32 %v1913_v43, %v1911_v41  ;;  %v377_v46 = vmul.f32 %v1913_v43, %v1913_v43 }
  0xac   :  { %347 = vadd.xlane.f32.xlu2 %v346_v45  ;;  %v394_v48 = vadd.f32 %v377_v46, %v376_v44 }
  0xad   :  { %v281_v49 = vpop.f32.mrf.mxu2 }
  0xae   :  { %v1923_v50 = vadd.f32 %v281_v49, %v124_v37  ;;  %v322_v51 = vpop.f32.mrf.mxu3  ;;  %395 = vadd.xlane.f32.xlu0 %v394_v48  ;;  %v202_v52 = vpop.f32.mrf.mxu0 }
  0xaf   :  { %v1925_v53 = vadd.f32 %v322_v51, %v124_v37  ;;  %v1927_v54 = vadd.f32 %v202_v52, %v129_v25  ;;  %v243_v55 = vpop.f32.mrf.mxu1 }
  0xb0   :  { %2635 = vst [vmem:[#allocation15_spill] sm:$0xff] %v1923_v50  ;;  %v1929_v56 = vadd.f32 %v243_v55, %v129_v25  ;;  %v456_v0 = vmul.f32 %v1923_v50, %v1923_v50 }
  0xb1   :  { %2636 = vst [vmem:[#allocation16_spill] sm:$0xff] %v1925_v53  ;;  %v426_v57 = vadd.f32 %v1925_v53, %v1923_v50  ;;  %v457_v2 = vmul.f32 %v1925_v53, %v1925_v53  ;;  %v378_v20 = vmul.f32 %v1927_v54, %v1927_v54 }
  0xb2   :  { %v349_v58 = vadd.f32 %v1929_v56, %v1927_v54 }
  0xb3   :  { %v474_v10 = vadd.f32 %v457_v2, %v456_v0 }
  0xb4   :  { %427 = vadd.xlane.f32.xlu2 %v426_v57  ;;  %350 = vadd.xlane.f32.xlu1 %v349_v58 }
  0xb5   :  { %v284_v60 = vpop.f32.mrf.mxu2 }
  0xb6   :  { %v1935_v61 = vadd.f32 %v284_v60, %v129_v25  ;;  %v325_v62 = vpop.f32.mrf.mxu3  ;;  %v205_v63 = vpop.f32.mrf.mxu0 }
  0xb7   :  { %v1941_v3 = vadd.f32 %v325_v62, %v129_v25  ;;  %v1943_v4 = vadd.f32 %v205_v63, %v134_v59  ;;  %v246_v5 = vpop.f32.mrf.mxu1  ;;  %v379_v25 = vmul.f32 %v1929_v56, %v1929_v56 }
  0xb8   :  { %2637 = vst [vmem:[#allocation17_spill] sm:$0xff] %v1935_v61  ;;  %v1945_v6 = vadd.f32 %v246_v5, %v134_v59  ;;  %v458_v29 = vmul.f32 %v1935_v61, %v1935_v61 }
  0xb9   :  { %2638 = vst [vmem:[#allocation18_spill] sm:$0xff] %v1941_v3  ;;  %v429_v14 = vadd.f32 %v1941_v3, %v1935_v61  ;;  %v459_v31 = vmul.f32 %v1941_v3, %v1941_v3  ;;  %v397_v36 = vadd.f32 %v379_v25, %v378_v20  ;;  %v380_v49 = vmul.f32 %v1943_v4, %v1943_v4 }
  0xba   :  { %v352_v16 = vadd.f32 %v1945_v6, %v1943_v4  ;;  %v381_v51 = vmul.f32 %v1945_v6, %v1945_v6 }
  0xbb   :  { %v477_v37 = vadd.f32 %v459_v31, %v458_v29 }
  0xbc   :  { %475 = vadd.xlane.f32.xlu2 %v474_v10  ;;  %430 = vadd.xlane.f32.xlu1 %v429_v14 }
  0xbd   :  { %353 = vadd.xlane.f32.xlu0 %v352_v16  ;;  %v287_v17 = vpop.f32.mrf.mxu2 }
  0xbe   :  { %v328_v18 = vpop.f32.mrf.mxu3  ;;  %v208_v19 = vpop.f32.mrf.mxu0  ;;  %v1959_v33 = vadd.f32 %v287_v17, %v134_v59 }
  0xbf   :  { %v1961_v34 = vadd.f32 %v328_v18, %v134_v59  ;;  %v249_v35 = vpop.f32.mrf.mxu1  ;;  %v1966_v44 = vadd.f32 %v208_v19, %v1921_v47  ;;  %v400_v59 = vadd.f32 %v381_v51, %v380_v49 }
  0xc0   :  { %2639 = vst [vmem:[#allocation19_spill] sm:$0xff] %v1959_v33  ;;  %v1969_v45 = vadd.f32 %v249_v35, %v1921_v47  ;;  %v460_v55 = vmul.f32 %v1959_v33, %v1959_v33 }
  0xc1   :  { %2640 = vst [vmem:[#allocation20_spill] sm:$0xff] %v1961_v34  ;;  %v432_v40 = vadd.f32 %v1961_v34, %v1959_v33  ;;  %v461_v57 = vmul.f32 %v1961_v34, %v1961_v34  ;;  %v382_v14 = vmul.f32 %v1966_v44, %v1966_v44 }
  0xc2   :  { %v355_v58 = vadd.f32 %v1969_v45, %v1966_v44  ;;  %v383_v16 = vmul.f32 %v1969_v45, %v1969_v45 }
  0xc3   :  { %v480_v60 = vadd.f32 %v461_v57, %v460_v55 }
  0xc4   :  { %398 = vadd.xlane.f32.xlu2 %v397_v36  ;;  %478 = vadd.xlane.f32.xlu1 %v477_v37  ;;  %v403_v29 = vadd.f32 %v383_v16, %v382_v14 }
  0xc5   :  { %433 = vadd.xlane.f32.xlu0 %v432_v40  ;;  %v290_v42 = vpop.f32.mrf.mxu2 }
  0xc6   :  { %v331_v46 = vpop.f32.mrf.mxu3  ;;  %v211_v48 = vpop.f32.mrf.mxu0  ;;  %v1982_v63 = vadd.f32 %v290_v42, %v1921_v47 }
  0xc7   :  { %v252_v52 = vpop.f32.mrf.mxu1  ;;  %v1985_v0 = vadd.f32 %v331_v46, %v1921_v47  ;;  %v2008_v31 = vadd.f32 %v211_v48, %v1883_v22 }
  0xc8   :  { %2641 = vst [vmem:[#allocation21_spill] sm:$0xff] %v1982_v63  ;;  %v2011_v35 = vadd.f32 %v252_v52, %v1883_v22  ;;  %v462_v57 = vmul.f32 %v1982_v63, %v1982_v63 }
  0xc9   :  { %2642 = vst [vmem:[#allocation22_spill] sm:$0xff] %v1985_v0  ;;  %v435_v19 = vadd.f32 %v1985_v0, %v1982_v63 }
  0xca   :  { %v358_v48 = vadd.f32 %v2011_v35, %v2008_v31 }
  0xcc   :  { %356 = vadd.xlane.f32.xlu2 %v355_v58  ;;  %401 = vadd.xlane.f32.xlu1 %v400_v59  ;;  %v463_v58 = vmul.f32 %v1985_v0, %v1985_v0 }
  0xcd   :  { %481 = vadd.xlane.f32.xlu0 %v480_v60  ;;  %v293_v62 = vpop.f32.mrf.mxu2 }
  0xce   :  { %v1988_v2 = vadd.f32 %v293_v62, %v1883_v22  ;;  %v334_v5 = vpop.f32.mrf.mxu3  ;;  %v214_v17 = vpop.f32.mrf.mxu0  ;;  %v483_v62 = vadd.f32 %v463_v58, %v462_v57 }
  0xcf   :  { %v1991_v10 = vadd.f32 %v334_v5, %v1883_v22  ;;  %v255_v18 = vpop.f32.mrf.mxu1  ;;  %v2002_v20 = vadd.f32 %v214_v17, %v1881_v21  ;;  %v114_v5 = vpop.permute.xlu1 %113 }
  0xd0   :  { %v2005_v25 = vadd.f32 %v255_v18, %v1881_v21  ;;  %v464_v36 = vmul.f32 %v1988_v2, %v1988_v2  ;;  %v2040_v16 = vadd.f32 %v1885_v23, %v114_v5  ;;  %v2043_v17 = vadd.f32 %v1887_v24, %v114_v5 }
  0xd1   :  { %2643 = vst [vmem:[#allocation23_spill] sm:$0xff] %v1991_v10  ;;  %v438_v47 = vadd.f32 %v1991_v10, %v1988_v2  ;;  %v465_v37 = vmul.f32 %v1991_v10, %v1991_v10  ;;  %v386_v40 = vmul.f32 %v2002_v20, %v2002_v20  ;;  %v384_v18 = vmul.f32 %v2008_v31, %v2008_v31 }
  0xd2   :  { %v387_v42 = vmul.f32 %v2005_v25, %v2005_v25  ;;  %v340_v23 = vadd.f32 %v2043_v17, %v2040_v16 }
  0xd3   :  { %v486_v51 = vadd.f32 %v465_v37, %v464_v36  ;;  %v2062_v37 = vadd.f32 %v1889_v26, %v114_v5  ;;  %v372_v26 = vmul.f32 %v2040_v16, %v2040_v16 }
  0xd4   :  { %436 = vadd.xlane.f32.xlu2 %v435_v19  ;;  %439 = vadd.xlane.f32.xlu1 %v438_v47  ;;  %v409_v55 = vadd.f32 %v387_v42, %v386_v40  ;;  %v385_v19 = vmul.f32 %v2011_v35, %v2011_v35  ;;  %v2051_v47 = vadd.f32 %v1907_v38, %v1891_v27 }
  0xd5   :  { %404 = vadd.xlane.f32.xlu0 %v403_v29  ;;  %v296_v46 = vpop.f32.mrf.mxu2  ;;  %v2055_v29 = vadd.f32 %v1909_v39, %v1891_v27  ;;  %2648 = vst [vmem:[#allocation28_spill] sm:$0xff] %v2062_v37  ;;  %v2065_v38 = vadd.f32 %v1893_v28, %v114_v5  ;;  %v361_v40 = vadd.f32 %v2005_v25, %v2002_v20 }
  0xd6   :  { %v337_v49 = vpop.f32.mrf.mxu3  ;;  %v2024_v22 = vadd.f32 %v296_v46, %v1881_v21  ;;  %2646 = vst [vmem:[#allocation26_spill] sm:$0xff] %v2051_v47  ;;  %v406_v36 = vadd.f32 %v385_v19, %v384_v18  ;;  %v454_v27 = vmul.f32 %v2051_v47, %v2051_v47  ;;  %v373_v28 = vmul.f32 %v2043_v17, %v2043_v17 }
  0xd7   :  { %v2027_v52 = vadd.f32 %v337_v49, %v1881_v21  ;;  %2647 = vst [vmem:[#allocation27_spill] sm:$0xff] %v2055_v29  ;;  %v423_v24 = vadd.f32 %v2055_v29, %v2051_v47  ;;  %v455_v39 = vmul.f32 %v2055_v29, %v2055_v29  ;;  %v420_v42 = vadd.f32 %v2065_v38, %v2062_v37 }
  0xd8   :  { %2644 = vst [vmem:[#allocation24_spill] sm:$0xff] %v2024_v22  ;;  %v466_v59 = vmul.f32 %v2024_v22, %v2024_v22  ;;  %v388_v49 = vadd.f32 %v373_v28, %v372_v26 }
  0xd9   :  { %2645 = vst [vmem:[#allocation25_spill] sm:$0xff] %v2027_v52  ;;  %v467_v60 = vmul.f32 %v2027_v52, %v2027_v52  ;;  %v441_v21 = vadd.f32 %v2027_v52, %v2024_v22  ;;  %v471_v46 = vadd.f32 %v455_v39, %v454_v27 }
  0xda   :  { %2649 = vst [vmem:[#allocation29_spill] sm:$0xff] %v2065_v38 }
  0xdb   :  { %v489_v14 = vadd.f32 %v467_v60, %v466_v59 }
  0xdc   :  { %359 = vadd.xlane.f32.xlu2 %v358_v48  ;;  %487 = vadd.xlane.f32.xlu1 %v486_v51  ;;  %v452_v48 = vmul.f32 %v2062_v37, %v2062_v37  ;;  %v453_v51 = vmul.f32 %v2065_v38, %v2065_v38 }
  0xdd   :  { %410 = vadd.xlane.f32.xlu0 %v409_v55 }
  0xde   :  { %v468_v55 = vadd.f32 %v453_v51, %v452_v48 }
  0xe4   :  { %484 = vadd.xlane.f32.xlu2 %v483_v62  ;;  %442 = vadd.xlane.f32.xlu1 %v441_v21 }
  0xe5   :  { %490 = vadd.xlane.f32.xlu0 %v489_v14 }
  0xec   :  { %407 = vadd.xlane.f32.xlu2 %v406_v36  ;;  %341 = vadd.xlane.f32.xlu1 %v340_v23 }
  0xed   :  { %424 = vadd.xlane.f32.xlu0 %v423_v24 }
  0xf4   :  { %362 = vadd.xlane.f32.xlu2 %v361_v40  ;;  %421 = vadd.xlane.f32.xlu1 %v420_v42 }
  0xf5   :  { %472 = vadd.xlane.f32.xlu0 %v471_v46 }
  0xfc   :  { %389 = vadd.xlane.f32.xlu2 %v388_v49 }
 0x104   :  { %469 = vadd.xlane.f32.xlu2 %v468_v55 }
 0x117   :  { %v345_v57 = vpop.xlane.xlu0 %344 }
 0x118   :  { %v365_v59 = vmul.f32 0.00390625, %v345_v57 }
 0x119   :  { %v393_v58 = vpop.xlane.xlu1 %392 }
 0x11a   :  { %v413_v60 = vmul.f32 0.00390625, %v393_v58 }
 0x11c   :  { %v2084_v62 = vsel %vm508_vm1, %v365_v59, %v413_v60 }
 0x11f   :  { %v348_v21 = vpop.xlane.xlu2 %347 }
 0x120   :  { %v366_v18 = vmul.f32 0.00390625, %v348_v21 }
 0x121   :  { %v396_v5 = vpop.xlane.xlu0 %395 }
 0x122   :  { %v414_v14 = vmul.f32 0.00390625, %v396_v5 }
 0x124   :  { %v511_v24 = vsel %vm508_vm1, %v366_v18, %v414_v14 }
 0x127   :  { %v428_v19 = vpop.xlane.xlu2 %427  ;;  %v351_v36 = vpop.xlane.xlu1 %350 }
 0x128   :  { %v446_v23 = vmul.f32 0.00390625, %v428_v19  ;;  %v367_v3 = vmul.f32 0.00390625, %v351_v36 }
 0x12a   :  { %v520_v27 = vsel %vm517_vm2, %v511_v24, %v446_v23 }
 0x12f   :  { %v476_v39 = vpop.xlane.xlu2 %475  ;;  %v431_v40 = vpop.xlane.xlu1 %430 }
 0x130   :  { %v494_v42 = vmul.f32 0.00390625, %v476_v39  ;;  %v354_v46 = vpop.xlane.xlu0 %353 }
 0x131   :  { %v368_v61 = vmul.f32 0.00390625, %v354_v46 }
 0x132   :  { %v2089_v26 = vsel %vm526_vm3, %v520_v27, %v494_v42 }
 0x137   :  { %v399_v28 = vpop.xlane.xlu2 %398  ;;  %v479_v49 = vpop.xlane.xlu1 %478 }
 0x138   :  { %v434_v48 = vpop.xlane.xlu0 %433  ;;  %v415_v52 = vmul.f32 0.00390625, %v399_v28 }
 0x139   :  { %v448_v46 = vmul.f32 0.00390625, %v434_v48 }
 0x13f   :  { %v357_v51 = vpop.xlane.xlu2 %356  ;;  %v402_v57 = vpop.xlane.xlu1 %401 }
 0x140   :  { %v482_v55 = vpop.xlane.xlu0 %481  ;;  %v416_v27 = vmul.f32 0.00390625, %v402_v57  ;;  %v369_v22 = vmul.f32 0.00390625, %v357_v51  ;;  %v512_v51 = vsel %vm508_vm1, %v367_v3, %v415_v52 }
 0x147   :  { %v437_v58 = vpop.xlane.xlu2 %436  ;;  %v440_v60 = vpop.xlane.xlu1 %439 }
 0x148   :  { %v405_v59 = vpop.xlane.xlu0 %404  ;;  %v450_v34 = vmul.f32 0.00390625, %v440_v60 }
 0x149   :  { %v417_v29 = vmul.f32 0.00390625, %v405_v59  ;;  %v513_v59 = vsel %vm508_vm1, %v368_v61, %v416_v27  ;;  %v496_v61 = vmul.f32 0.00390625, %v482_v55 }
 0x14b   :  { %v514_v36 = vsel %vm508_vm1, %v369_v22, %v417_v29  ;;  %v495_v22 = vmul.f32 0.00390625, %v479_v49 }
 0x14f   :  { %v360_v21 = vpop.xlane.xlu2 %359  ;;  %v488_v14 = vpop.xlane.xlu1 %487 }
 0x150   :  { %v411_v5 = vpop.xlane.xlu0 %410  ;;  %v370_v38 = vmul.f32 0.00390625, %v360_v21 }
 0x151   :  { %v419_v47 = vmul.f32 0.00390625, %v411_v5 }
 0x157   :  { %v485_v18 = vpop.xlane.xlu2 %484  ;;  %v443_v24 = vpop.xlane.xlu1 %442 }
 0x158   :  { %v491_v19 = vpop.xlane.xlu0 %490  ;;  %v451_v33 = vmul.f32 0.00390625, %v443_v24  ;;  %v497_v5 = vmul.f32 0.00390625, %v485_v18 }
 0x159   :  { %v499_v0 = vmul.f32 0.00390625, %v491_v19 }
 0x15f   :  { %v408_v23 = vpop.xlane.xlu2 %407  ;;  %v342_v63 = vpop.xlane.xlu1 %341 }
 0x160   :  { %v418_v39 = vmul.f32 0.00390625, %v408_v23  ;;  %v425_v42 = vpop.xlane.xlu0 %424  ;;  %v449_v23 = vmul.f32 0.00390625, %v437_v58  ;;  %v364_v3 = vmul.f32 0.00390625, %v342_v63 }
 0x161   :  { %v445_v58 = vmul.f32 0.00390625, %v425_v42  ;;  %v501_v42 = vld [vmem:[#allocation5 + $0x8] sm:$0xff] }
 0x162   :  { %v515_v50 = vsel %vm508_vm1, %v370_v38, %v418_v39  ;;  %v500_v39 = vld [vmem:[#allocation5] sm:$0xff] }
 0x163   :  { %v524_v21 = vsel %vm517_vm2, %v515_v50, %v450_v34  ;;  %v522_v50 = vsel %vm517_vm2, %v513_v59, %v448_v46  ;;  %v519_v49 = vsel %vm517_vm2, %v2084_v62, %v445_v58  ;;  %v503_v62 = vld [vmem:[#allocation5 + $0x18] sm:$0xff] }
 0x164   :  { %v531_v48 = vsel %vm526_vm3, %v522_v50, %v496_v61  ;;  %v507_v59 = vld [vmem:[#allocation5 + $0x38] sm:$0xff] }
 0x167   :  { %v363_v37 = vpop.xlane.xlu2 %362 }
 0x168   :  { %v371_v53 = vmul.f32 0.00390625, %v363_v37  ;;  %v498_v37 = vmul.f32 0.00390625, %v488_v14 }
 0x16a   :  { %v516_v10 = vsel %vm508_vm1, %v371_v53, %v419_v47  ;;  %v533_v28 = vsel %vm526_vm3, %v524_v21, %v498_v37  ;;  %v447_v53 = vmul.f32 0.00390625, %v431_v40  ;;  %v422_v40 = vpop.xlane.xlu1 %421  ;;  %v506_v21 = vld [vmem:[#allocation5 + $0x30] sm:$0xff] }
 0x16b   :  { %v525_v57 = vsel %vm517_vm2, %v516_v10, %v451_v33  ;;  %v523_v33 = vsel %vm517_vm2, %v514_v36, %v449_v23  ;;  %v473_v10 = vpop.xlane.xlu0 %472  ;;  %v444_v14 = vmul.f32 0.00390625, %v422_v40  ;;  %v504_v23 = vld [vmem:[#allocation5 + $0x20] sm:$0xff] }
 0x16c   :  { %v534_v38 = vsel %vm526_vm3, %v525_v57, %v499_v0  ;;  %v532_v34 = vsel %vm526_vm3, %v523_v33, %v497_v5  ;;  %v521_v0 = vsel %vm517_vm2, %v512_v51, %v447_v53  ;;  %v493_v52 = vmul.f32 0.00390625, %v473_v10  ;;  %v505_v57 = vld [vmem:[#allocation5 + $0x28] sm:$0xff] }
 0x16d   :  { %568 = vmatpush.msrb.mxu0 %v534_v38  ;;  %v530_v60 = vsel %vm526_vm3, %v521_v0, %v495_v22 }
 0x16e   :  { %v528_v24 = vsel %vm526_vm3, %v519_v49, %v493_v52 }
 0x16f   :  { %569 = vmatpush.msrb.mxu0 %v533_v28  ;;  %v390_v47 = vpop.xlane.xlu2 %389 }
 0x170   :  { %v412_v29 = vmul.f32 0.00390625, %v390_v47 }
 0x171   :  { %570 = vmatpush.msrb.mxu0 %v532_v34 }
 0x172   :  { %v509_v55 = vsel %vm508_vm1, %v364_v3, %v412_v29  ;;  %v1711_v29 = vmov 2   ;;  %v1712_v3 = vmov 1  }
 0x173   :  { %571 = vmatpush.msrb.mxu0 %v531_v48  ;;  %v518_v63 = vsel %vm517_vm2, %v509_v55, %v444_v14  ;;  %1519 = vset.pattern.permute.xlu1 %v1711_v29 }
 0x175   :  { %572 = vmatpush.msrb.mxu0 %v530_v60 }
 0x177   :  { %573 = vmatpush.msrb.mxu0 %v2089_v26  ;;  %v470_v18 = vpop.xlane.xlu2 %469  ;;  %v502_v26 = vld [vmem:[#allocation5 + $0x10] sm:$0xff] }
 0x178   :  { %v492_v19 = vmul.f32 0.00390625, %v470_v18 }
 0x179   :  { %574 = vmatpush.msrb.mxu0 %v528_v24 }
 0x17a   :  { %v527_v27 = vsel %vm526_vm3, %v518_v63, %v492_v19 }
 0x17b   :  { %575 = vmatpush.msrb.mxu0 %v527_v27 }
 0x17c   :  { %1471 = vmatmul.msk.f32.vlgmr.msrb.gmra.mxu0 %vm535_vm4, %v500_v39 }
 0x184   :  { %1472 = vmatmul.msk.f32.gmra.mxu0 %vm535_vm4, %v501_v42 }
 0x18c   :  { %1473 = vmatmul.msk.f32.gmra.mxu0 %vm535_vm4, %v502_v26 }
 0x194   :  { %1474 = vmatmul.msk.f32.gmra.mxu0 %vm535_vm4, %v503_v62 }
 0x19c   :  { %1475 = vmatmul.msk.f32.gmra.mxu0 %vm535_vm4, %v504_v23 }
 0x1a4   :  { %1476 = vmatmul.msk.f32.gmra.mxu0 %vm535_vm4, %v505_v57 }
 0x1ac   :  { %1477 = vmatmul.msk.f32.gmra.mxu0 %vm535_vm4, %v506_v21 }
 0x1b4   :  { %1478 = vmatmul.msk.f32.gmra.mxu0 %vm535_vm4, %v507_v59 }
 0x1f9   :  { %v2121_v37 = vpop.f32.mrf.mxu0 }
 0x1fa   :  { %v605_v0 = vmul.f32 %v2121_v37, %v2121_v37 }
 0x201   :  { %v2123_v5 = vpop.f32.mrf.mxu0 }
 0x202   :  { %v606_v33 = vmul.f32 %v2123_v5, %v2123_v5 }
 0x209   :  { %v2125_v38 = vpop.f32.mrf.mxu0 }
 0x20a   :  { %v607_v22 = vmul.f32 %v2125_v38, %v2125_v38 }
 0x211   :  { %v2127_v36 = vpop.f32.mrf.mxu0 }
 0x212   :  { %v608_v34 = vmul.f32 %v2127_v36, %v2127_v36 }
 0x219   :  { %v2129_v46 = vpop.f32.mrf.mxu0 }
 0x21a   :  { %v609_v28 = vmul.f32 %v2129_v46, %v2129_v46 }
 0x21c   :  { %629 = vrot.lane.b32.xlu0 %v609_v28, %s1710_s1 }
 0x221   :  { %v2133_v51 = vpop.f32.mrf.mxu0 }
 0x222   :  { %v610_v53 = vmul.f32 %v2133_v51, %v2133_v51 }
 0x224   :  { %631 = vrot.lane.b32.xlu2 %v610_v53, %s1710_s1 }
 0x229   :  { %v2137_v47 = vpop.f32.mrf.mxu0 }
 0x22a   :  { %v611_v50 = vmul.f32 %v2137_v47, %v2137_v47 }
 0x22c   :  { %623 = vrot.lane.b32.xlu2 %v606_v33, %s1710_s1  ;;  %633 = vrot.lane.b32.xlu1 %v611_v50, %s1710_s1 }
 0x231   :  { %v2143_v61 = vpop.f32.mrf.mxu0 }
 0x232   :  { %v612_v10 = vmul.f32 %v2143_v61, %v2143_v61 }
 0x234   :  { %773 = vperm.xlu2 %1518, %v2137_v47   ;;  %627 = vrot.lane.b32.xlu1 %v608_v34, %s1710_s1 }
 0x235   :  { %635 = vrot.lane.b32.xlu0 %v612_v10, %s1710_s1 }
 0x23c   :  { %621 = vrot.lane.b32.xlu1 %v605_v0, %s1710_s1  ;;  %1520 = vset.pattern.permute.xlu2 %v1712_v3 }
 0x23d   :  { %625 = vrot.lane.b32.xlu0 %v607_v22, %s1710_s1 }
 0x244   :  { %890 = vperm.xlu1 %1519, %v1789_v7  }
 0x245   :  { %778 = vperm.xlu0 %1516, %v2143_v61  }
 0x24c   :  { %886 = vperm.xlu1 %1519, %v1814_v11  }
 0x24d   :  { %768 = vperm.xlu0 %1516, %v2133_v51  }
 0x254   :  { %882 = vperm.xlu1 %1519, %v1780_v1  }
 0x255   :  { %763 = vperm.xlu0 %1516, %v2129_v46  }
 0x25c   :  { %878 = vperm.xlu1 %1519, %v1804_v9  }
 0x25d   :  { %758 = vperm.xlu0 %1516, %v2127_v36  }
 0x264   :  { %874 = vperm.xlu1 %1519, %v1799_v8  }
 0x265   :  { %753 = vperm.xlu0 %1516, %v2125_v38  }
 0x26c   :  { %1521 = vset.pattern.permute.xlu1 %v1712_v3 }
 0x26d   :  { %748 = vperm.xlu0 %1516, %v2123_v5  }
 0x275   :  { %743 = vperm.xlu0 %1516, %v2121_v37  }
 0x27d   :  { %1523 = vset.pattern.permute.xlu0 %v1712_v3 }
 0x27e   :  { %v632_v23 = vpop.permute.xlu2 %631 }
 0x27f   :  { %v650_v28 = vsub.f32 %v2133_v51, %v632_v23 }
 0x281   :  { %v2183_v0 = vadd.f32 1e-05, %v650_v28 }
 0x28e   :  { %v630_v58 = vpop.permute.xlu0 %629 }
 0x28f   :  { %v649_v49 = vsub.f32 %v2129_v46, %v630_v58 }
 0x291   :  { %v2175_v26 = vadd.f32 1e-05, %v649_v49 }
 0x293   :  { %vm707_vm2 = vweird.f32 %v2175_v26 }
 0x29e   :  { %v634_v48 = vpop.permute.xlu1 %633 }
 0x2a6   :  { %v628_v52 = vpop.permute.xlu1 %627 }
 0x2a7   :  { %v648_v40 = vsub.f32 %v2127_v36, %v628_v52  ;;  %v636_v60 = vpop.permute.xlu0 %635 }
 0x2a8   :  { %v652_v55 = vsub.f32 %v2143_v61, %v636_v60 }
 0x2a9   :  { %v2169_v14 = vadd.f32 1e-05, %v648_v40 }
 0x2aa   :  { %v660_v18 = vadd.f32 1e-05, %v652_v55 }
 0x2ab   :  { %vm697_vm15 = vweird.f32 %v2169_v14 }
 0x2ac   :  { %1531 = vrsqrt.f32 %v660_v18  ;;  %vm737_vm6 = vweird.f32 %v660_v18 }
 0x2ad   :  { %1533 = vrsqrt.f32 %v2169_v14 }
 0x2ae   :  { %v622_v19 = vpop.permute.xlu1 %621 }
 0x2af   :  { %v645_v24 = vsub.f32 %v2121_v37, %v622_v19  ;;  %v626_v63 = vpop.permute.xlu0 %625  ;;  %v651_v19 = vsub.f32 %v2137_v47, %v634_v48 }
 0x2b0   :  { %v647_v39 = vsub.f32 %v2125_v38, %v626_v63 }
 0x2b1   :  { %v653_v27 = vadd.f32 1e-05, %v645_v24 }
 0x2b2   :  { %v1532_v42 = vpop.eup %1531  ;;  %v655_v62 = vadd.f32 1e-05, %v647_v39 }
 0x2b3   :  { %v732_v57 = vmul.f32 %v1532_v42, %v660_v18  ;;  %1535 = vrsqrt.f32 %v653_v27  ;;  %v2177_v21 = vpop.eup %1533  ;;  %vm738_vm5 = vweird.f32 %v1532_v42  ;;  %vm667_vm10 = vweird.f32 %v653_v27 }
 0x2b4   :  { %1537 = vrsqrt.f32 %v655_v62  ;;  %v692_v53 = vmul.f32 %v2177_v21, %v2169_v14  ;;  %vm739_vm7 = vmor %vm737_vm6, %vm738_vm5  ;;  %vm687_vm12 = vweird.f32 %v655_v62  ;;  %vm698_vm14 = vweird.f32 %v2177_v21 }
 0x2b5   :  { %v733_v59 = vmul.f32 %v1532_v42, %v732_v57  ;;  %1539 = vrsqrt.f32 %v2175_v26  ;;  %vm699_vm0 = vmor %vm697_vm15, %vm698_vm14  ;;  %vm717_vm6 = vweird.f32 %v2183_v0  ;;  %vm1381_vm14 = vcmask 1040384  }
 0x2b6   :  { %v693_v58 = vmul.f32 %v2177_v21, %v692_v53  ;;  %1541 = vrsqrt.f32 %v2183_v0  ;;  %v624_v53 = vpop.permute.xlu2 %623  ;;  %vm1368_vm15 = vcmask 531456  }
 0x2b7   :  { %v734_v33 = vmul.f32 0.5, %v733_v59 }
 0x2b8   :  { %v694_v39 = vmul.f32 0.5, %v693_v58 }
 0x2b9   :  { %v1536_v50 = vpop.eup %1535  ;;  %v735_v34 = vsub.f32 1.5, %v734_v33 }
 0x2ba   :  { %v1538_v10 = vpop.eup %1537  ;;  %v662_v22 = vmul.f32 %v1536_v50, %v653_v27  ;;  %vm668_vm8 = vweird.f32 %v1536_v50  ;;  %v695_v33 = vsub.f32 1.5, %v694_v39 }
 0x2bb   :  { %v682_v3 = vmul.f32 %v1538_v10, %v655_v62  ;;  %v736_v52 = vmul.f32 %v1532_v42, %v735_v34  ;;  %v2186_v40 = vpop.eup %1539  ;;  %vm688_vm9 = vweird.f32 %v1538_v10  ;;  %vm669_vm11 = vmor %vm667_vm10, %vm668_vm8 }
 0x2bc   :  { %v663_v60 = vmul.f32 %v1536_v50, %v662_v22  ;;  %v702_v18 = vmul.f32 %v2186_v40, %v2175_v26  ;;  %v1542_v34 = vpop.eup %1541  ;;  %vm689_vm13 = vmor %vm687_vm12, %vm688_vm9  ;;  %vm708_vm1 = vweird.f32 %v2186_v40 }
 0x2bd   :  { %v683_v55 = vmul.f32 %v1538_v10, %v682_v3  ;;  %v2188_v49 = vsel %vm739_vm7, %v1532_v42, %v736_v52  ;;  %v2196_v42 = vadd.f32 1e-05, %v651_v19  ;;  %v646_v52 = vsub.f32 %v2123_v5, %v624_v53  ;;  %vm709_vm3 = vmor %vm707_vm2, %vm708_vm1 }
 0x2be   :  { %v664_v24 = vmul.f32 0.5, %v663_v60  ;;  %v804_v63 = vmul.f32 %v2188_v49, %v1789_v7  ;;  %v703_v48 = vmul.f32 %v2186_v40, %v702_v18  ;;  %v712_v60 = vmul.f32 %v1542_v34, %v2183_v0 }
 0x2bf   :  { %v684_v23 = vmul.f32 0.5, %v683_v55  ;;  %1543 = vrsqrt.f32 %v2196_v42  ;;  %vm718_vm5 = vweird.f32 %v1542_v34  ;;  %vm727_vm9 = vweird.f32 %v2196_v42 }
 0x2c0   :  { %v665_v57 = vsub.f32 1.5, %v664_v24  ;;  %842 = vperm.xlu1 %1521, %v804_v63   ;;  %v704_v62 = vmul.f32 0.5, %v703_v48  ;;  %v713_v55 = vmul.f32 %v1542_v34, %v712_v60  ;;  %vm719_vm7 = vmor %vm717_vm6, %vm718_vm5 }
 0x2c1   :  { %v685_v59 = vsub.f32 1.5, %v684_v23 }
 0x2c2   :  { %v666_v28 = vmul.f32 %v1536_v50, %v665_v57  ;;  %v705_v19 = vsub.f32 1.5, %v704_v62  ;;  %v714_v39 = vmul.f32 0.5, %v713_v55  ;;  %v2262_v62 = vpop.permute.xlu1 %890 }
 0x2c3   :  { %v686_v7 = vmul.f32 %v1538_v10, %v685_v59 }
 0x2c4   :  { %v2199_v22 = vsel %vm669_vm11, %v1536_v50, %v666_v28  ;;  %v696_v50 = vmul.f32 %v2177_v21, %v695_v33  ;;  %v706_v14 = vmul.f32 %v2186_v40, %v705_v19  ;;  %v774_v19 = vpop.permute.xlu2 %773 }
 0x2c5   :  { %v797_v58 = vmul.f32 %v2199_v22, %v1829_v13  ;;  %v2203_v3 = vsel %vm689_vm13, %v1538_v10, %v686_v7  ;;  %v654_v10 = vadd.f32 1e-05, %v646_v52  ;;  %v1544_v63 = vpop.eup %1543 }
 0x2c6   :  { %v799_v27 = vmul.f32 %v2203_v3, %v1824_v12  ;;  %v2216_v24 = vsel %vm699_vm0, %v2177_v21, %v696_v50  ;;  %v722_v23 = vmul.f32 %v1544_v63, %v2196_v42  ;;  %v715_v21 = vsub.f32 1.5, %v714_v39  ;;  %v779_v42 = vpop.permute.xlu0 %778 }
 0x2c7   :  { %807 = vperm.xlu0 %1523, %v797_v58   ;;  %1545 = vrsqrt.f32 %v654_v10  ;;  %v800_v18 = vmul.f32 %v2216_v24, %v1799_v8  ;;  %v2228_v59 = vsel %vm709_vm3, %v2186_v40, %v706_v14  ;;  %vm728_vm8 = vweird.f32 %v1544_v63 }
 0x2c8   :  { %1522 = vset.pattern.permute.xlu1 %v1711_v29  ;;  %817 = vperm.xlu2 %1520, %v799_v27   ;;  %v723_v57 = vmul.f32 %v1544_v63, %v722_v23  ;;  %v801_v53 = vmul.f32 %v2228_v59, %v1804_v9  ;;  %v716_v7 = vmul.f32 %v1542_v34, %v715_v21  ;;  %vm729_vm10 = vmor %vm727_vm9, %vm728_vm8  ;;  %vm677_vm12 = vweird.f32 %v654_v10 }
 0x2c9   :  { %870 = vperm.xlu1 %1522, %v1824_v12   ;;  %v1714_v23 = vmov 3  }
 0x2ca   :  { %v724_v33 = vmul.f32 0.5, %v723_v57  ;;  %v2237_v58 = vsel %vm719_vm7, %v1542_v34, %v716_v7  ;;  %v796_v57 = vsub.f32 %v2005_v25, %v779_v42  ;;  %v2295_v7 = vld [vmem:[%s2616_s4 + $0x70] sm:$0xff] }
 0x2cb   :  { %v802_v9 = vmul.f32 %v2237_v58, %v1780_v1 }
 0x2cc   :  { %v725_v40 = vsub.f32 1.5, %v724_v33 }
 0x2cd   :  { %v1546_v28 = vpop.eup %1545 }
 0x2ce   :  { %v672_v48 = vmul.f32 %v1546_v28, %v654_v10  ;;  %v726_v27 = vmul.f32 %v1544_v63, %v725_v40  ;;  %vm678_vm11 = vweird.f32 %v1546_v28  ;;  %v2268_v10 = vpop.permute.xlu1 %886 }
 0x2cf   :  { %1125 = vrot.lane.b32.xlu0 %v1780_v1, %s1713_s28  ;;  %vm679_vm13 = vmor %vm677_vm12, %vm678_vm11 }
 0x2d0   :  { %822 = vperm.xlu2 %1520, %v800_v18   ;;  %v673_v26 = vmul.f32 %v1546_v28, %v672_v48  ;;  %v2244_v0 = vsel %vm729_vm10, %v1544_v63, %v726_v27  ;;  %1527 = vset.pattern.permute.xlu0 %v1714_v23 }
 0x2d1   :  { %862 = vperm.xlu1 %1522, %v1829_v13   ;;  %v803_v34 = vmul.f32 %v2244_v0, %v1814_v11 }
 0x2d2   :  { %v674_v52 = vmul.f32 0.5, %v673_v26  ;;  %v2300_v26 = vld [vmem:[%s2616_s4 + $0x78] sm:$0xff] }
 0x2d6   :  { %v2272_v55 = vpop.permute.xlu1 %882 }
 0x2d7   :  { %1119 = vrot.lane.b32.xlu0 %v1824_v12, %s1713_s28  ;;  %v675_v12 = vsub.f32 1.5, %v674_v52 }
 0x2d8   :  { %827 = vperm.xlu2 %1520, %v801_v53  }
 0x2d9   :  { %1127 = vrot.lane.b32.xlu1 %v1814_v11, %s1713_s28  ;;  %v676_v60 = vmul.f32 %v1546_v28, %v675_v12  ;;  %v769_v11 = vpop.permute.xlu0 %768 }
 0x2db   :  { %v2250_v1 = vsel %vm679_vm13, %v1546_v28, %v676_v60  ;;  %v792_v60 = vsub.f32 %v1969_v45, %v769_v11 }
 0x2de   :  { %v2277_v18 = vpop.permute.xlu1 %878 }
 0x2e0   :  { %832 = vperm.xlu2 %1520, %v802_v9  }
 0x2e1   :  { %1121 = vrot.lane.b32.xlu1 %v1799_v8, %s1713_s28  ;;  %v798_v8 = vmul.f32 %v2250_v1, %v1839_v15  ;;  %v764_v50 = vpop.permute.xlu0 %763 }
 0x2e8   :  { %837 = vperm.xlu2 %1520, %v803_v34   ;;  %v791_v34 = vsub.f32 %v1966_v44, %v769_v11 }
 0x2e9   :  { %1115 = vrot.lane.b32.xlu1 %v1829_v13, %s1713_s28  ;;  %v1571_v13 = vld [vmem:[%s2614_s2 + $0x38] sm:$0xff] }
 0x2f0   :  { %812 = vperm.xlu2 %1520, %v798_v8   ;;  %v793_v8 = vsub.f32 %v2008_v31, %v774_v19 }
 0x2f1   :  { %1092 = vperm.xlu1 %1522, %v2137_v47   ;;  %v1572_v47 = vld [vmem:[%s2614_s2 + $0x20] sm:$0xff] }
 0x2f8   :  { %1524 = vset.pattern.permute.xlu2 %v1711_v29 }
 0x2f9   :  { %1076 = vperm.xlu1 %1522, %v2125_v38   ;;  %866 = vperm.xlu2 %1524, %v1839_v15   ;;  %v759_v38 = vpop.permute.xlu0 %758 }
 0x301   :  { %1129 = vrot.lane.b32.xlu2 %v1571_v13, %s1713_s28  ;;  %v2275_v63 = vpop.permute.xlu0 %753  ;;  %v794_v13 = vsub.f32 %v2011_v35, %v774_v19 }
 0x302   :  { %v785_v19 = vsub.f32 %v1911_v41, %v2275_v63  ;;  %v2360_v41 = vld [vmem:[%s2616_s4 + $0x40] sm:$0xff] }
 0x309   :  { %1123 = vrot.lane.b32.xlu2 %v1572_v47, %s1713_s28  ;;  %v2283_v14 = vpop.permute.xlu0 %748  ;;  %v790_v47 = vsub.f32 %v1945_v6, %v764_v50  ;;  %v2327_v6 = vld [vmem:[%s2616_s4 + $0x60] sm:$0xff] }
 0x311   :  { %1117 = vrot.lane.b32.xlu2 %v1839_v15, %s1713_s28  ;;  %v2286_v15 = vpop.permute.xlu1 %874  ;;  %v2290_v28 = vpop.permute.xlu0 %743 }
 0x319   :  { %1096 = vperm.xlu2 %1524, %v2143_v61   ;;  %v795_v61 = vsub.f32 %v2002_v20, %v779_v42  ;;  %v789_v42 = vsub.f32 %v1943_v4, %v764_v50 }
 0x321   :  { %1088 = vperm.xlu2 %1524, %v2133_v51  }
 0x322   :  { %v2280_v39 = vpop.permute.xlu2 %817 }
 0x329   :  { %1525 = vset.pattern.permute.xlu2 %v1714_v23 }
 0x32a   :  { %v823_v21 = vpop.permute.xlu2 %822 }
 0x332   :  { %v843_v53 = vpop.permute.xlu1 %842  ;;  %v828_v51 = vpop.permute.xlu2 %827 }
 0x333   :  { %v859_v48 = vmul.f32 %v843_v53, %v795_v61  ;;  %v860_v33 = vmul.f32 %v843_v53, %v796_v57  ;;  %v854_v45 = vmul.f32 %v828_v51, %v790_v47 }
 0x335   :  { %v907_v20 = vadd.f32 %v2262_v62, %v859_v48  ;;  %v908_v25 = vadd.f32 %v2262_v62, %v860_v33  ;;  %v787_v48 = vsub.f32 %v1927_v54, %v759_v38  ;;  %v788_v33 = vsub.f32 %v1929_v56, %v759_v38  ;;  %v2332_v54 = vld [vmem:[%s2616_s4 + $0x68] sm:$0xff] }
 0x337   :  { %v939_v40 = vadd.f32 %v2295_v7, %v907_v20  ;;  %v2306_v9 = vadd.f32 %v2300_v26, %v908_v25  ;;  %v853_v20 = vmul.f32 %v828_v51, %v789_v42  ;;  %v851_v4 = vmul.f32 %v823_v21, %v787_v48  ;;  %v2345_v51 = vld [vmem:[%s2616_s4 + $0x50] sm:$0xff] }
 0x338   :  { %v852_v35 = vmul.f32 %v823_v21, %v788_v33  ;;  %v786_v21 = vsub.f32 %v1913_v43, %v2275_v63  ;;  %v902_v43 = vadd.f32 %v2277_v18, %v854_v45  ;;  %v849_v63 = vmul.f32 %v2280_v39, %v785_v19  ;;  %v2381_v33 = vld [vmem:[%s2616_s4 + $0x30] sm:$0xff] }
 0x339   :  { %955 = vmatpush.msrb.mxu1 %v939_v40  ;;  %978 = vmatpush.msrb.mxu2 %v2306_v9  ;;  %v2309_v52 = vpop.permute.xlu0 %807  ;;  %v899_v47 = vadd.f32 %v2286_v15, %v851_v4  ;;  %v2398_v4 = vld [vmem:[%s2616_s4 + $0x20] sm:$0xff]  ;;  %v784_v19 = vsub.f32 %v1899_v32, %v2283_v14  ;;  %v2430_v32 = vld [vmem:[%s2616_s4 + $0x18] sm:$0xff] }
 0x33a   :  { %1025 = vmatpush.xpose.msrb.mxu3 %v939_v40  ;;  %v833_v27 = vpop.permute.xlu2 %832  ;;  %v850_v42 = vmul.f32 %v2280_v39, %v786_v21  ;;  %v781_v21 = vsub.f32 %v2040_v16, %v2290_v28 }
 0x33b   :  { %v2311_v12 = vpop.permute.xlu1 %870  ;;  %v855_v61 = vmul.f32 %v833_v27, %v791_v34  ;;  %v856_v57 = vmul.f32 %v833_v27, %v792_v60  ;;  %v2350_v27 = vld [vmem:[%s2616_s4 + $0x58] sm:$0xff]  ;;  %v901_v34 = vadd.f32 %v2277_v18, %v853_v20 }
 0x33c   :  { %v2386_v20 = vld [vmem:[%s2616_s4 + $0x38] sm:$0xff]  ;;  %v897_v45 = vadd.f32 %v2311_v12, %v849_v63 }
 0x33d   :  { %v903_v50 = vadd.f32 %v2272_v55, %v855_v61  ;;  %v904_v38 = vadd.f32 %v2272_v55, %v856_v57  ;;  %v933_v39 = vadd.f32 %v2360_v41, %v901_v34  ;;  %v782_v34 = vsub.f32 %v2043_v17, %v2290_v28  ;;  %v2438_v28 = vld [vmem:[%s2616_s4] sm:$0xff] }
 0x33f   :  { %v935_v61 = vadd.f32 %v2345_v51, %v903_v50  ;;  %v2374_v57 = vadd.f32 %v2350_v27, %v904_v38  ;;  %v783_v38 = vsub.f32 %v1896_v30, %v2283_v14  ;;  %v2425_v30 = vld [vmem:[%s2616_s4 + $0x10] sm:$0xff] }
 0x341   :  { %v1126_v53 = vpop.permute.xlu0 %1125 }
 0x342   :  { %v838_v25 = vpop.permute.xlu2 %837  ;;  %v1144_v44 = vmul.f32 %v1126_v53, %v2237_v58  ;;  %v900_v53 = vadd.f32 %v2286_v15, %v852_v35  ;;  %v2403_v35 = vld [vmem:[%s2616_s4 + $0x28] sm:$0xff] }
 0x343   :  { %v857_v11 = vmul.f32 %v838_v25, %v793_v8  ;;  %v858_v31 = vmul.f32 %v838_v25, %v794_v13  ;;  %v2322_v40 = vpop.permute.xlu1 %862  ;;  %v2368_v13 = vld [vmem:[%s2616_s4 + $0x48] sm:$0xff] }
 0x344   :  { %1174 = vperm.xlu0 %1527, %v1144_v44   ;;  %v2390_v44 = vadd.f32 %v2368_v13, %v902_v43 }
 0x345   :  { %v905_v56 = vadd.f32 %v2268_v10, %v857_v11  ;;  %v906_v58 = vadd.f32 %v2268_v10, %v858_v31  ;;  %v898_v11 = vadd.f32 %v2311_v12, %v850_v42  ;;  %v846_v42 = vmul.f32 %v2309_v52, %v782_v34 }
 0x347   :  { %v937_v60 = vadd.f32 %v2327_v6, %v905_v56  ;;  %v2355_v8 = vadd.f32 %v2332_v54, %v906_v58  ;;  %v931_v56 = vadd.f32 %v2381_v33, %v899_v47  ;;  %v932_v58 = vadd.f32 %v2386_v20, %v900_v53 }
 0x348   :  { %v930_v50 = vadd.f32 %v2403_v35, %v898_v11 }
 0x349   :  { %956 = vmatpush.msrb.mxu1 %v937_v60  ;;  %979 = vmatpush.msrb.mxu2 %v2355_v8 }
 0x34a   :  { %1026 = vmatpush.xpose.msrb.mxu3 %v937_v60  ;;  %v813_v48 = vpop.permute.xlu2 %812  ;;  %v845_v60 = vmul.f32 %v2309_v52, %v781_v21  ;;  %v894_v52 = vadd.f32 %v2322_v40, %v846_v42 }
 0x34b   :  { %v1128_v25 = vpop.permute.xlu1 %1127  ;;  %957 = vmatpush.msrb.mxu1 %v935_v61  ;;  %980 = vmatpush.msrb.mxu2 %v2374_v57  ;;  %v847_v43 = vmul.f32 %v813_v48, %v783_v38  ;;  %v848_v63 = vmul.f32 %v813_v48, %v784_v19 }
 0x34c   :  { %v1145_v31 = vmul.f32 %v1128_v25, %v2244_v0  ;;  %v929_v0 = vadd.f32 %v2398_v4, %v897_v45  ;;  %v893_v14 = vadd.f32 %v2322_v40, %v845_v60 }
 0x34d   :  { %958 = vmatpush.msrb.mxu1 %v933_v39  ;;  %981 = vmatpush.msrb.mxu2 %v2390_v44 }
 0x34e   :  { %1027 = vmatpush.xpose.msrb.mxu3 %v935_v61  ;;  %1179 = vperm.xlu2 %1525, %v1145_v31   ;;  %v601_v61 = vld [vmem:[#allocation7] sm:$0xff]  ;;  %v925_v25 = vadd.f32 %v2438_v28, %v893_v14  ;;  %v2652_v14 = vld [vmem:[#allocation22_spill] sm:$0xff] }
 0x34f   :  { %959 = vmatpush.msrb.mxu1 %v931_v56  ;;  %982 = vmatpush.msrb.mxu2 %v932_v58  ;;  %v2451_v45 = vmul.f32 0.125, %v601_v61 }
 0x351   :  { %960 = vmatpush.msrb.mxu1 %v929_v0  ;;  %983 = vmatpush.msrb.mxu2 %v930_v50 }
 0x352   :  { %1028 = vmatpush.xpose.msrb.mxu3 %v933_v39  ;;  %v2447_v39 = vld [vmem:[%s2616_s4 + $0x8] sm:$0xff]  ;;  %s1715_s4 = smov [#allocation10]  }
 0x353   :  { %v2420_v47 = vpop.permute.xlu2 %866  ;;  %v926_v11 = vadd.f32 %v2447_v39, %v894_v52  ;;  %s1422_s15 = sshll.u32 %s1715_s4, 4  ;;  %s1423_s15 = int_to_ptr.vmem [resolvable:$true] %s1422_s15 }
 0x354   :  { %v895_v16 = vadd.f32 %v2420_v47, %v847_v43  ;;  %v896_v17 = vadd.f32 %v2420_v47, %v848_v63 }
 0x356   :  { %1029 = vmatpush.xpose.msrb.mxu3 %v931_v56  ;;  %1526 = vset.pattern.permute.xlu2 %v1711_v29  ;;  %v927_v53 = vadd.f32 %v2425_v30, %v895_v16  ;;  %v928_v48 = vadd.f32 %v2430_v32, %v896_v17  ;;  %v2651_v16 = vld [vmem:[#allocation21_spill] sm:$0xff] }
 0x357   :  { %1084 = vperm.xlu2 %1526, %v2129_v46   ;;  %v602_v46 = vld [vmem:[#allocation7 + $0x8] sm:$0xff] }
 0x358   :  { %961 = vmatpush.msrb.mxu1 %v927_v53  ;;  %984 = vmatpush.msrb.mxu2 %v928_v48  ;;  %v2461_v56 = vmul.f32 0.125, %v602_v46  ;;  %v2655_v46 = vld [vmem:[#allocation19_spill] sm:$0xff] }
 0x35a   :  { %1030 = vmatpush.xpose.msrb.mxu3 %v929_v0  ;;  %962 = vmatpush.msrb.mxu1 %v925_v25 }
 0x35b   :  { %985 = vmatpush.msrb.mxu2 %v926_v11  ;;  %v1130_v31 = vpop.permute.xlu2 %1129  ;;  %1479 = vmatmul.msk.f32.vlgmr.msrb.gmra.mxu1 %vm535_vm4, %v2451_v45 }
 0x35c   :  { %1048 = vmatpush.xpose.msra.mxu1 %v2306_v9  ;;  %1481 = vmatmul.msk.f32.vlgmr.msrb.gmra.mxu2 %vm535_vm4, %v2451_v45 }
 0x35e   :  { %1031 = vmatpush.xpose.msrb.mxu3 %v927_v53  ;;  %v2653_v53 = vld [vmem:[#allocation24_spill] sm:$0xff] }
 0x35f   :  { %1080 = vperm.xlu2 %1526, %v2127_v36   ;;  %v1122_v36 = vpop.permute.xlu1 %1121 }
 0x360   :  { %1049 = vmatpush.xpose.msra.mxu1 %v2355_v8  ;;  %v1142_v8 = vmul.f32 %v1122_v36, %v2216_v24 }
 0x362   :  { %1032 = vmatpush.xpose.msrb.mxu3 %v925_v25  ;;  %v2654_v25 = vld [vmem:[#allocation25_spill] sm:$0xff] }
 0x363   :  { %v1124_v0 = vpop.permute.xlu2 %1123  ;;  %1480 = vmatmul.msk.f32.gmra.mxu1 %vm535_vm4, %v2461_v56 }
 0x364   :  { %1050 = vmatpush.xpose.msra.mxu1 %v2374_v57  ;;  %1482 = vmatmul.msk.f32.gmra.mxu2 %vm535_vm4, %v2461_v56  ;;  %v1143_v9 = vmul.f32 %v1124_v0, %v2228_v59  ;;  %v1146_v57 = vmul.f32 %v1130_v31, %v2188_v49  ;;  %v1120_v59 = vpop.permute.xlu0 %1119 }
 0x367   :  { %1528 = vset.pattern.permute.xlu2 %v1714_v23  ;;  %v1116_v24 = vpop.permute.xlu1 %1115 }
 0x368   :  { %1051 = vmatpush.xpose.msra.mxu1 %v2390_v44  ;;  %1169 = vperm.xlu2 %1528, %v1143_v9   ;;  %v1141_v44 = vmul.f32 %v1120_v59, %v2203_v3  ;;  %v2650_v3 = vld [vmem:[#allocation23_spill] sm:$0xff] }
 0x36c   :  { %1052 = vmatpush.xpose.msra.mxu1 %v932_v58  ;;  %v2477_v58 = vpop.permute.xlu2 %1117 }
 0x370   :  { %1053 = vmatpush.xpose.msra.mxu1 %v930_v50  ;;  %1164 = vperm.xlu2 %1528, %v1142_v8   ;;  %v1139_v50 = vmul.f32 %v1116_v24, %v2199_v22  ;;  %v2656_v8 = vld [vmem:[#allocation20_spill] sm:$0xff] }
 0x374   :  { %1054 = vmatpush.xpose.msra.mxu1 %v928_v48  ;;  %v1097_v38 = vpop.permute.xlu2 %1096 }
 0x375   :  { %v1113_v48 = vsub.f32 %v2653_v53, %v1097_v38 }
 0x378   :  { %1055 = vmatpush.xpose.msra.mxu1 %v926_v11  ;;  %1529 = vset.pattern.permute.xlu2 %v1711_v29  ;;  %v1114_v11 = vsub.f32 %v2654_v25, %v1097_v38  ;;  %v2658_v38 = vld [vmem:[#allocation18_spill] sm:$0xff] }
 0x379   :  { %1072 = vperm.xlu2 %1529, %v2123_v5  }
 0x37c   :  { %v1089_v19 = vpop.permute.xlu2 %1088 }
 0x37d   :  { %v1109_v17 = vsub.f32 %v2651_v16, %v1089_v19  ;;  %v1110_v22 = vsub.f32 %v2652_v14, %v1089_v19  ;;  %v2657_v19 = vld [vmem:[#allocation17_spill] sm:$0xff] }
 0x381   :  { %1530 = vset.pattern.permute.xlu2 %v1714_v23  ;;  %v1093_v23 = vpop.permute.xlu1 %1092 }
 0x382   :  { %1184 = vperm.xlu2 %1530, %v1146_v57   ;;  %v1111_v43 = vsub.f32 %v1988_v2, %v1093_v23  ;;  %v1112_v63 = vsub.f32 %v2650_v3, %v1093_v23 }
 0x38a   :  { %1159 = vperm.xlu2 %1530, %v1141_v44  }
 0x392   :  { %1149 = vperm.xlu2 %1530, %v1139_v50  }
 0x3a8   :  { %v1180_v29 = vpop.permute.xlu2 %1179 }
 0x3a9   :  { %v1199_v52 = vmul.f32 %v1180_v29, %v1111_v43  ;;  %v1200_v61 = vmul.f32 %v1180_v29, %v1112_v63  ;;  %v1077_v43 = vpop.permute.xlu1 %1076 }
 0x3ab   :  { %v1215_v24 = vadd.f32 %v1199_v52, %v2268_v10  ;;  %v1216_v50 = vadd.f32 %v1200_v61, %v2268_v10 }
 0x3b1   :  { %v1085_v21 = vpop.permute.xlu2 %1084 }
 0x3b2   :  { %v1107_v0 = vsub.f32 %v2655_v46, %v1085_v21  ;;  %v1108_v57 = vsub.f32 %v2656_v8, %v1085_v21 }
 0x3b6   :  { %v1175_v42 = vpop.permute.xlu0 %1174 }
 0x3b7   :  { %v1197_v9 = vmul.f32 %v1175_v42, %v1109_v17  ;;  %v1198_v36 = vmul.f32 %v1175_v42, %v1110_v22 }
 0x3b9   :  { %v1081_v5 = vpop.permute.xlu2 %1080  ;;  %v1213_v21 = vadd.f32 %v1197_v9, %v2272_v55  ;;  %v1214_v14 = vadd.f32 %v1198_v36, %v2272_v55  ;;  %v2514_v55 = vadd.f32 %v1215_v24, %v2327_v6 }
 0x3ba   :  { %v1105_v29 = vsub.f32 %v2657_v19, %v1081_v5  ;;  %v1106_v3 = vsub.f32 %v2658_v38, %v1081_v5  ;;  %v2659_v5 = vld [vmem:[#allocation15_spill] sm:$0xff] }
 0x3bb   :  { %v2521_v46 = vadd.f32 %v1213_v21, %v2345_v51 }
 0x3c2   :  { %v1170_v34 = vpop.permute.xlu2 %1169 }
 0x3c3   :  { %v1195_v23 = vmul.f32 %v1170_v34, %v1107_v0  ;;  %v1196_v63 = vmul.f32 %v1170_v34, %v1108_v57  ;;  %v1103_v34 = vsub.f32 %v2659_v5, %v1077_v43  ;;  %v2524_v0 = vadd.f32 %v1214_v14, %v2350_v27 }
 0x3ca   :  { %v1165_v49 = vpop.permute.xlu2 %1164 }
 0x3cb   :  { %v1193_v22 = vmul.f32 %v1165_v49, %v1105_v29  ;;  %v1194_v10 = vmul.f32 %v1165_v49, %v1106_v3 }
 0x3d3   :  { %v2480_v60 = vpop.permute.xlu2 %1072 }
 0x3d8   :  { %v2488_v31 = vpop.f32.mrf.mxu1 }
 0x3dc   :  { %v1185_v2 = vpop.permute.xlu2 %1184 }
 0x3dd   :  { %v1201_v59 = vmul.f32 %v1185_v2, %v1113_v48  ;;  %v1202_v44 = vmul.f32 %v1185_v2, %v1114_v11  ;;  %v2660_v48 = vld [vmem:[#allocation16_spill] sm:$0xff]  ;;  %v1212_v11 = vadd.f32 %v1196_v63, %v2277_v18 }
 0x3de   :  { %v1104_v25 = vsub.f32 %v2660_v48, %v1077_v43 }
 0x3df   :  { %v1217_v16 = vadd.f32 %v1201_v59, %v2262_v62  ;;  %v1218_v42 = vadd.f32 %v1202_v44, %v2262_v62  ;;  %v987_v17 = vpop.f32.mrf.mxu2  ;;  %v1211_v62 = vadd.f32 %v1195_v23, %v2277_v18  ;;  %v1210_v18 = vadd.f32 %v1194_v10, %v2286_v15 }
 0x3e0   :  { %v993_v52 = vmax.f32 %v2488_v31, %v987_v17  ;;  %v967_v6 = vpop.f32.mrf.mxu1 }
 0x3e1   :  { %v2502_v61 = vadd.f32 %v1217_v16, %v2295_v7  ;;  %v2505_v53 = vadd.f32 %v1218_v42, %v2300_v26  ;;  %v2517_v7 = vadd.f32 %v1216_v50, %v2332_v54  ;;  %v1209_v26 = vadd.f32 %v1193_v22, %v2286_v15 }
 0x3e2   :  { %994 = vmax.xlane.f32.xlu0 %v993_v52  ;;  %v2530_v54 = vadd.f32 %v1211_v62, %v2360_v41  ;;  %v2537_v15 = vadd.f32 %v1212_v11, %v2368_v13  ;;  %v2545_v57 = vadd.f32 %v1210_v18, %v2386_v20 }
 0x3e3   :  { %1243 = vmatpush.msra.mxu2 %v2502_v61  ;;  %1266 = vmatpush.msra.mxu3 %v2505_v53  ;;  %v2542_v41 = vadd.f32 %v1209_v26, %v2381_v33  ;;  %v1140_v33 = vmul.f32 %v2477_v58, %v2250_v1 }
 0x3e4   :  { %v1160_v49 = vpop.permute.xlu2 %1159 }
 0x3e5   :  { %v1191_v9 = vmul.f32 %v1160_v49, %v1103_v34  ;;  %v1192_v36 = vmul.f32 %v1160_v49, %v1104_v25  ;;  %1244 = vmatpush.msra.mxu2 %v2514_v55  ;;  %1267 = vmatpush.msra.mxu3 %v2517_v7  ;;  %v2663_v34 = vld [vmem:[#allocation28_spill] sm:$0xff]  ;;  %v2664_v25 = vld [vmem:[#allocation29_spill] sm:$0xff] }
 0x3e7   :  { %v1207_v2 = vadd.f32 %v1191_v9, %v2311_v12  ;;  %v1208_v51 = vadd.f32 %v1192_v36, %v2311_v12  ;;  %v990_v8 = vpop.f32.mrf.mxu2  ;;  %1245 = vmatpush.msra.mxu2 %v2521_v46  ;;  %1268 = vmatpush.msra.mxu3 %v2524_v0 }
 0x3e8   :  { %v996_v27 = vmax.f32 %v967_v6, %v990_v8 }
 0x3e9   :  { %1246 = vmatpush.msra.mxu2 %v2530_v54  ;;  %1269 = vmatpush.msra.mxu3 %v2537_v15  ;;  %v2550_v12 = vadd.f32 %v1207_v2, %v2398_v4  ;;  %v2553_v13 = vadd.f32 %v1208_v51, %v2403_v35 }
 0x3ea   :  { %997 = vmax.xlane.f32.xlu1 %v996_v27 }
 0x3eb   :  { %1247 = vmatpush.msra.mxu2 %v2542_v41  ;;  %1270 = vmatpush.msra.mxu3 %v2545_v57 }
 0x3ec   :  { %v1150_v11 = vpop.permute.xlu2 %1149 }
 0x3ed   :  { %1248 = vmatpush.msra.mxu2 %v2550_v12  ;;  %1271 = vmatpush.msra.mxu3 %v2553_v13 }
 0x3f6   :  { %1154 = vperm.xlu0 %1527, %v1140_v33  }
 0x403   :  { %1068 = vperm.xlu1 %1522, %v2121_v37   ;;  %v2661_v37 = vld [vmem:[#allocation26_spill] sm:$0xff] }
 0x404   :  { %v1101_v58 = vsub.f32 %v2661_v37, %v2480_v60 }
 0x455   :  { %v995_v20 = vpop.xlane.xlu0 %994 }
 0x456   :  { %v999_v59 = vsub.f32 %v2488_v31, %v995_v20  ;;  %v1000_v44 = vsub.f32 %v987_v17, %v995_v20  ;;  %v2662_v31 = vld [vmem:[#allocation27_spill] sm:$0xff] }
 0x457   :  { %v1102_v3 = vsub.f32 %v2662_v31, %v2480_v60 }
 0x458   :  { %v1003_v24 = vmul.f32 1.442695, %v999_v59  ;;  %v1005_v4 = vmul.f32 1.442695, %v1000_v44 }
 0x45a   :  { %1547 = vpow2.f32 %v1003_v24 }
 0x45b   :  { %1549 = vpow2.f32 %v1005_v4 }
 0x45d   :  { %v998_v35 = vpop.xlane.xlu1 %997 }
 0x45e   :  { %v1001_v50 = vsub.f32 %v967_v6, %v998_v35  ;;  %v1002_v19 = vsub.f32 %v990_v8, %v998_v35 }
 0x460   :  { %v1548_v29 = vpop.eup %1547  ;;  %v1007_v23 = vmul.f32 1.442695, %v1001_v50  ;;  %v1009_v43 = vmul.f32 1.442695, %v1002_v19 }
 0x461   :  { %v1550_v38 = vpop.eup %1549  ;;  %1033 = vmatmul.f32.vlgmr.msrb.gmra.mxu3 %v1548_v29 }
 0x462   :  { %1551 = vpow2.f32 %v1007_v23  ;;  %1056 = vmatmul.f32.vlgmr.msra.gmra.mxu1 %v1550_v38  ;;  %v2561_v1 = vadd.f32 %v1550_v38, %v1548_v29 }
 0x463   :  { %1553 = vpow2.f32 %v1009_v43 }
 0x468   :  { %v1552_v63 = vpop.eup %1551  ;;  %v1155_v16 = vpop.permute.xlu0 %1154 }
 0x469   :  { %v1554_v42 = vpop.eup %1553  ;;  %v1189_v17 = vmul.f32 %v1155_v16, %v1101_v58  ;;  %v1190_v21 = vmul.f32 %v1155_v16, %v1102_v3  ;;  %1036 = vmatmul.f32.gmra.mxu3 %v1552_v63 }
 0x46a   :  { %1059 = vmatmul.f32.gmra.mxu1 %v1554_v42  ;;  %v1014_v14 = vadd.f32 %v1554_v42, %v1552_v63 }
 0x46b   :  { %v1205_v22 = vadd.f32 %v1189_v17, %v2420_v47  ;;  %v1206_v52 = vadd.f32 %v1190_v21, %v2420_v47 }
 0x46c   :  { %1015 = vadd.xlane.f32.xlu2 %v1014_v14 }
 0x46d   :  { %v1221_v10 = vadd.f32 %v1205_v22, %v2425_v30  ;;  %v1222_v5 = vadd.f32 %v1206_v52, %v2430_v32  ;;  %v1366_v32 = vld [vmem:[#allocation8 + $0x38] sm:$0xff] }
 0x46f   :  { %1249 = vmatpush.msra.mxu2 %v1221_v10  ;;  %1272 = vmatpush.msra.mxu3 %v1222_v5 }
 0x475   :  { %v1069_v60 = vpop.permute.xlu1 %1068 }
 0x476   :  { %v1099_v48 = vsub.f32 %v2663_v34, %v1069_v60  ;;  %v1100_v62 = vsub.f32 %v2664_v25, %v1069_v60 }
 0x478   :  { %v1187_v26 = vmul.f32 %v1150_v11, %v1099_v48  ;;  %v1188_v49 = vmul.f32 %v1150_v11, %v1100_v62 }
 0x47a   :  { %v1203_v18 = vadd.f32 %v1187_v26, %v2322_v40  ;;  %v1204_v9 = vadd.f32 %v1188_v49, %v2322_v40  ;;  %v1367_v40 = vld [vmem:[#allocation8 + $0x40] sm:$0x1] }
 0x47b   :  { %1492 = vmatpush.msk.msrb.mxu1 %vm1381_vm14, %v1367_v40  ;;  %1487 = vmatpush.msk.msra.mxu0 %vm1381_vm14, %v1367_v40 }
 0x47c   :  { %v1219_v47 = vadd.f32 %v1203_v18, %v2438_v28  ;;  %v1220_v30 = vadd.f32 %v1204_v9, %v2447_v39  ;;  %v1365_v28 = vld [vmem:[#allocation8 + $0x30] sm:$0xff]  ;;  %v1364_v39 = vld [vmem:[#allocation8 + $0x28] sm:$0xff] }
 0x47d   :  { %1493 = vmatpush.msrb.mxu1 %v1366_v32  ;;  %1393 = vmatpush.msra.mxu0 %v1366_v32 }
 0x47e   :  { %1250 = vmatpush.msra.mxu2 %v1219_v47  ;;  %1273 = vmatpush.msra.mxu3 %v1220_v30 }
 0x47f   :  { %1483 = vmatmul.msk.f32.vlgmr.msra.gmra.mxu2 %vm535_vm4, %v2451_v45  ;;  %1485 = vmatmul.msk.f32.vlgmr.msra.gmra.mxu3 %vm535_vm4, %v2451_v45  ;;  %v1363_v45 = vld [vmem:[#allocation8 + $0x20] sm:$0xff] }
 0x480   :  { %1313 = vmatpush.xpose.msrb.mxu2 %v2502_v61  ;;  %1336 = vmatpush.xpose.msrb.mxu3 %v2505_v53  ;;  %v1361_v61 = vld [vmem:[#allocation8 + $0x10] sm:$0xff]  ;;  %v1360_v53 = vld [vmem:[#allocation8 + $0x8] sm:$0xff] }
 0x481   :  { %1494 = vmatpush.msrb.mxu1 %v1365_v28  ;;  %1394 = vmatpush.msra.mxu0 %v1365_v28 }
 0x483   :  { %1495 = vmatpush.msrb.mxu1 %v1364_v39  ;;  %1395 = vmatpush.msra.mxu0 %v1364_v39 }
 0x484   :  { %1314 = vmatpush.xpose.msrb.mxu2 %v2514_v55  ;;  %1337 = vmatpush.xpose.msrb.mxu3 %v2517_v7  ;;  %v1359_v55 = vld [vmem:[#allocation8] sm:$0xff] }
 0x485   :  { %1496 = vmatpush.msrb.mxu1 %v1363_v45  ;;  %1396 = vmatpush.msra.mxu0 %v1363_v45 }
 0x487   :  { %1484 = vmatmul.msk.f32.gmra.mxu2 %vm535_vm4, %v2461_v56  ;;  %1486 = vmatmul.msk.f32.gmra.mxu3 %vm535_vm4, %v2461_v56  ;;  %v1362_v56 = vld [vmem:[#allocation8 + $0x18] sm:$0xff] }
 0x488   :  { %1315 = vmatpush.xpose.msrb.mxu2 %v2521_v46  ;;  %1338 = vmatpush.xpose.msrb.mxu3 %v2524_v0 }
 0x489   :  { %1497 = vmatpush.msrb.mxu1 %v1362_v56  ;;  %1397 = vmatpush.msra.mxu0 %v1362_v56 }
 0x48b   :  { %1498 = vmatpush.msrb.mxu1 %v1361_v61  ;;  %1398 = vmatpush.msra.mxu0 %v1361_v61 }
 0x48c   :  { %1316 = vmatpush.xpose.msrb.mxu2 %v2530_v54  ;;  %1339 = vmatpush.xpose.msrb.mxu3 %v2537_v15 }
 0x48d   :  { %1499 = vmatpush.msrb.mxu1 %v1360_v53  ;;  %1399 = vmatpush.msra.mxu0 %v1360_v53 }
 0x48f   :  { %1500 = vmatpush.msrb.mxu1 %v1359_v55  ;;  %1400 = vmatpush.msra.mxu0 %v1359_v55 }
 0x490   :  { %1317 = vmatpush.xpose.msrb.mxu2 %v2542_v41  ;;  %1340 = vmatpush.xpose.msrb.mxu3 %v2545_v57 }
 0x494   :  { %1318 = vmatpush.xpose.msrb.mxu2 %v2550_v12  ;;  %1341 = vmatpush.xpose.msrb.mxu3 %v2553_v13 }
 0x498   :  { %1319 = vmatpush.xpose.msrb.mxu2 %v1221_v10  ;;  %1342 = vmatpush.xpose.msrb.mxu3 %v1222_v5 }
 0x49c   :  { %1320 = vmatpush.xpose.msrb.mxu2 %v1219_v47  ;;  %1343 = vmatpush.xpose.msrb.mxu3 %v1220_v30 }
 0x4df   :  { %v1057_v7 = vpop.f32.mrf.mxu1  ;;  %v1016_v0 = vpop.xlane.xlu2 %1015 }
 0x4e0   :  { %1555 = vrcp.f32 %v1016_v0 }
 0x4e4   :  { %v1034_v46 = vpop.f32.mrf.mxu3 }
 0x4e5   :  { %v1058_v36 = vadd.f32 %v1057_v7, %v1034_v46 }
 0x4e6   :  { %v1556_v51 = vpop.eup %1555 }
 0x4e7   :  { %v1060_v6 = vpop.f32.mrf.mxu1 }
 0x4ec   :  { %v1037_v54 = vpop.f32.mrf.mxu3 }
 0x4ed   :  { %v1061_v2 = vadd.f32 %v1060_v6, %v1037_v54 }
 0x4ef   :  { %v1066_v8 = vmul.f32 %v1556_v51, %v1061_v2 }
 0x4f1   :  { %v1356_v15 = vsel %vm535_vm4, %v1066_v8, 1.0 }
 0x4f2   :  { %1489 = vmatmul.msk.f32.vlgmr.msrb.gmra.mxu1 %vm1368_vm15, %v1356_v15 }
 0x502   :  { %v1252_v27 = vpop.f32.mrf.mxu2  ;;  %v1275_v41 = vpop.f32.mrf.mxu3 }
 0x503   :  { %v1281_v57 = vmax.f32 %v1252_v27, %v1275_v41 }
 0x505   :  { %1282 = vmax.xlane.f32.xlu1 %v1281_v57 }
 0x50a   :  { %v1255_v12 = vpop.f32.mrf.mxu2  ;;  %v1278_v13 = vpop.f32.mrf.mxu3 }
 0x50b   :  { %v1284_v33 = vmax.f32 %v1255_v12, %v1278_v13 }
 0x50d   :  { %1285 = vmax.xlane.f32.xlu0 %v1284_v33 }
 0x515   :  { %1012 = vadd.xlane.f32.xlu0 %v2561_v1 }
 0x56f   :  { %v1405_v20 = vpop.f32.mrf.mxu1 }
 0x570   :  { %1415 = vst [vmem:[#allocation10 + $0x8] sm:$0xff] %v1405_v20 }
 0x578   :  { %v1283_v59 = vpop.xlane.xlu1 %1282 }
 0x579   :  { %v1287_v44 = vsub.f32 %v1252_v27, %v1283_v59  ;;  %v1288_v24 = vsub.f32 %v1275_v41, %v1283_v59 }
 0x57b   :  { %v1291_v4 = vmul.f32 1.442695, %v1287_v44  ;;  %v1293_v35 = vmul.f32 1.442695, %v1288_v24 }
 0x57d   :  { %1557 = vpow2.f32 %v1291_v4 }
 0x57e   :  { %1559 = vpow2.f32 %v1293_v35 }
 0x580   :  { %v1286_v50 = vpop.xlane.xlu0 %1285 }
 0x581   :  { %v1289_v19 = vsub.f32 %v1255_v12, %v1286_v50  ;;  %v1290_v29 = vsub.f32 %v1278_v13, %v1286_v50 }
 0x583   :  { %v1558_v23 = vpop.eup %1557  ;;  %v1295_v43 = vmul.f32 1.442695, %v1289_v19  ;;  %v1297_v38 = vmul.f32 1.442695, %v1290_v29 }
 0x584   :  { %v1560_v37 = vpop.eup %1559  ;;  %1321 = vmatmul.f32.vlgmr.msrb.gmra.mxu2 %v1558_v23 }
 0x585   :  { %1561 = vpow2.f32 %v1295_v43  ;;  %1344 = vmatmul.f32.vlgmr.msrb.gmra.mxu3 %v1560_v37  ;;  %v1299_v1 = vadd.f32 %v1560_v37, %v1558_v23 }
 0x586   :  { %1563 = vpow2.f32 %v1297_v38 }
 0x587   :  { %1300 = vadd.xlane.f32.xlu1 %v1299_v1 }
 0x588   :  { %v1013_v58 = vpop.xlane.xlu0 %1012 }
 0x589   :  { %1565 = vrcp.f32 %v1013_v58 }
 0x58b   :  { %v1562_v31 = vpop.eup %1561 }
 0x58c   :  { %v1564_v3 = vpop.eup %1563  ;;  %1324 = vmatmul.f32.gmra.mxu2 %v1562_v31 }
 0x58d   :  { %1347 = vmatmul.f32.gmra.mxu3 %v1564_v3  ;;  %v1302_v63 = vadd.f32 %v1564_v3, %v1562_v31 }
 0x58f   :  { %v1566_v16 = vpop.eup %1565  ;;  %1303 = vadd.xlane.f32.xlu2 %v1302_v63 }
 0x590   :  { %v1065_v42 = vmul.f32 %v1566_v16, %v1058_v36 }
 0x592   :  { %v1355_v17 = vsel %vm535_vm4, %v1065_v42, 1.0 }
 0x593   :  { %1488 = vmatmul.msk.f32.vlgmr.msra.gmra.mxu0 %vm1368_vm15, %v1355_v17 }
 0x5fa   :  { %v1301_v21 = vpop.xlane.xlu1 %1300 }
 0x5fb   :  { %1567 = vrcp.f32 %v1301_v21 }
 0x601   :  { %v1568_v5 = vpop.eup %1567 }
 0x602   :  { %v1304_v52 = vpop.xlane.xlu2 %1303 }
 0x603   :  { %1569 = vrcp.f32 %v1304_v52 }
 0x607   :  { %v1322_v14 = vpop.f32.mrf.mxu2 }
 0x608   :  { %v1345_v22 = vpop.f32.mrf.mxu3 }
 0x609   :  { %v1346_v10 = vadd.f32 %v1345_v22, %v1322_v14  ;;  %v1570_v26 = vpop.eup %1569 }
 0x60b   :  { %v1353_v60 = vmul.f32 %v1568_v5, %v1346_v10 }
 0x60d   :  { %v1357_v34 = vsel %vm535_vm4, %v1353_v60, 1.0 }
 0x60e   :  { %1490 = vmatmul.msk.f32.gmra.mxu1 %vm1368_vm15, %v1357_v34 }
 0x60f   :  { %v1325_v48 = vpop.f32.mrf.mxu2 }
 0x610   :  { %v1348_v25 = vpop.f32.mrf.mxu3  ;;  %v1402_v62 = vpop.f32.mrf.mxu0 }
 0x611   :  { %v1349_v11 = vadd.f32 %v1348_v25, %v1325_v48  ;;  %1414 = vst [vmem:[#allocation10] sm:$0xff] %v1402_v62 }
 0x613   :  { %v1354_v49 = vmul.f32 %v1570_v26, %v1349_v11 }
 0x615   :  { %v1358_v18 = vsel %vm535_vm4, %v1354_v49, 1.0 }
 0x616   :  { %1491 = vmatmul.msk.f32.gmra.mxu1 %vm1368_vm15, %v1358_v18 }
 0x68b   :  { %v1408_v9 = vpop.f32.mrf.mxu1 }
 0x68c   :  { %1416 = vst [vmem:[#allocation10 + $0x10] sm:$0xff] %v1408_v9 }
 0x693   :  { %v1411_v47 = vpop.f32.mrf.mxu1 }
 0x694   :  { %1417 = vst [vmem:[#allocation10 + $0x18] sm:$0xff] %v1411_v47 }
 0x695   :  { %1430 = dma.vmem_to_hbm [thread:$0]  %s1423_s15, 512, %s1425_s0, [#allocation4], %s1702_s9, %s1702_s9, %s1703_s10  }
 0x696   :  { %1699 = dma.done.wait [#allocation4], 512  }
 0x697   :  { %1700 = vsyncadd [#allocation4], 4294966784 }
 0x698   :  { %1435 = vsyncpa [#allocation3], 1 }
 0x699   :  { %1436 = vsyncpa [#allocation6], 1 }
 0x69a   :  { %1437 = vsyncpa [#allocation9], 1 }
 0x69b   :  { %1438 = vsyncpa [#allocation4], 1 }

</bundles_post_ra>
